<compile_context>
chip_gen: v7x
topology: tpu7x:2x2x1
jax: 0.10.0
libtpu: 0.0.40
codegen_flags: <defaults>
</compile_context>

<pallas_src>
import math

import jax
import jax.numpy as jnp
from jax.experimental import pallas as pl
from jax.experimental.pallas import tpu as pltpu


# -----------------------------------------------------------------------------
# Model configuration (mirrors AutomaticFeatureEngineer.__init__ defaults)
# -----------------------------------------------------------------------------
BASE_DIM = 768
BASE_FEATURE_DIM = max(100, BASE_DIM // 8)          # 100
ENGINEERED_FEATURE_DIM = max(50, BASE_DIM // 16)    # 50
TRANSFORMATION_LAYERS = 3


def _transformer_dims():
    dims = []
    cur = BASE_FEATURE_DIM
    for i in range(TRANSFORMATION_LAYERS):
        if i == TRANSFORMATION_LAYERS - 1:
            out = ENGINEERED_FEATURE_DIM
        else:
            out = min(cur * 2, BASE_DIM // 2)
        dims.append((cur, out))
        cur = out
    return dims


TRANSFORMER_DIMS = _transformer_dims()                       # [(100,200),(200,384),(384,50)]
SELECTOR_HIDDEN = max(64, ENGINEERED_FEATURE_DIM // 2)       # 64
IMPORTANCE_HIDDEN = max(32, ENGINEERED_FEATURE_DIM // 2)     # 32
HEAD_DIMS = [
    (ENGINEERED_FEATURE_DIM, SELECTOR_HIDDEN),
    (SELECTOR_HIDDEN, ENGINEERED_FEATURE_DIM),
    (ENGINEERED_FEATURE_DIM, IMPORTANCE_HIDDEN),
    (IMPORTANCE_HIDDEN, ENGINEERED_FEATURE_DIM),
]
LN_EPS = 1e-5


def _round_up(x, m):
    return ((x + m - 1) // m) * m


def _pad128(d):
    return _round_up(d, 128)


PAD_BASE = _pad128(BASE_FEATURE_DIM)                         # 128
PAD_TDIMS = [(_pad128(i), _pad128(o)) for i, o in TRANSFORMER_DIMS]
PAD_ENG = _pad128(ENGINEERED_FEATURE_DIM)                    # 128
PAD_SEL = _pad128(SELECTOR_HIDDEN)                           # 128
PAD_IMP = _pad128(IMPORTANCE_HIDDEN)                         # 128

MAX_TILE_B = 1024   # rows per grid step (comfortable for v7x's 64 MiB VMEM)


# -----------------------------------------------------------------------------
# Kernel helpers
# -----------------------------------------------------------------------------
def _gelu(x):
    # tanh-approx GELU: one EUP tanh + a few VALU ops instead of the erf
    # polynomial (the previous VALU-slot bottleneck).
    return jax.nn.gelu(x, approximate=True)


def _layernorm_zero_padded(h, gamma, beta, real_dim):
    """LayerNorm over the first `real_dim` lanes of a zero-padded activation.

    Padded lanes of `h` are exactly 0 (zero-padded weights/bias, GELU(0)=0),
    so sums over the full padded width equal sums over the real lanes and
    var = E[h^2] - mean^2 is exact without any lane mask.  gamma/beta are
    zero in the padded lanes, so padded output lanes stay exactly 0.
    """
    inv_d = 1.0 / real_dim
    mean = jnp.sum(h, axis=-1, keepdims=True) * inv_d
    var = jnp.sum(h * h, axis=-1, keepdims=True) * inv_d - mean * mean
    return (h - mean) * jax.lax.rsqrt(var + LN_EPS) * gamma + beta


# -----------------------------------------------------------------------------
# Kernel
# -----------------------------------------------------------------------------
def afe_kernel(
    x_ref,
    # transformer layer 0
    w0_ref, b0_ref, g0_ref, be0_ref,
    # transformer layer 1
    w1_ref, b1_ref, g1_ref, be1_ref,
    # transformer layer 2
    w2_ref, b2_ref, g2_ref, be2_ref,
    # feature selector
    ws1_ref, bs1_ref, ws2_ref, bs2_ref,
    # importance evaluator
    wi1_ref, bi1_ref, wi2_ref, bi2_ref,
    # outputs (lane-dense, padded to 128)
    eng_ref, sel_ref, imp_ref, raw_ref,
):
    x = x_ref[...]          # already bf16

    def linear(h, w_ref, b_ref):
        # bf16 x bf16 on the MXU, f32 accumulation; bias add in f32.
        return jnp.dot(h.astype(w_ref.dtype), w_ref[...],
                       preferred_element_type=jnp.float32) + b_ref[...]

    # --- feature_transformers: (Linear -> GELU -> LayerNorm -> Dropout) x 3 ---
    h = _layernorm_zero_padded(_gelu(linear(x, w0_ref, b0_ref)),
                               g0_ref[...], be0_ref[...], TRANSFORMER_DIMS[0][1])
    h = _layernorm_zero_padded(_gelu(linear(h, w1_ref, b1_ref)),
                               g1_ref[...], be1_ref[...], TRANSFORMER_DIMS[1][1])
    h = _layernorm_zero_padded(_gelu(linear(h, w2_ref, b2_ref)),
                               g2_ref[...], be2_ref[...], TRANSFORMER_DIMS[2][1])
    # h == raw_transformed, padded lanes exactly 0

    # --- feature_selector: Linear -> GELU -> Linear -> Sigmoid ---
    s = _gelu(linear(h, ws1_ref, bs1_ref))
    selection_weights = jax.nn.sigmoid(linear(s, ws2_ref, bs2_ref))

    selected = h * selection_weights     # padded lanes: 0 * 0.5 = 0

    # --- importance_evaluator: Linear -> GELU -> Linear -> Softmax(dim=-1) ---
    t = _gelu(linear(selected, wi1_ref, bi1_ref))
    logits = linear(t, wi2_ref, bi2_ref)
    lane = jax.lax.broadcasted_iota(jnp.int32, (1, PAD_ENG), 1)
    valid = lane < ENGINEERED_FEATURE_DIM
    logits = jnp.where(valid, logits, -1e30)
    m = jnp.max(logits, axis=-1, keepdims=True)
    e = jnp.exp(logits - m)
    e = jnp.where(valid, e, 0.0)
    denom = jnp.sum(e, axis=-1, keepdims=True)
    importance_weights = e * pl.reciprocal(denom, approx=True)

    eng_ref[...] = selected
    sel_ref[...] = selection_weights
    imp_ref[...] = importance_weights
    raw_ref[...] = h


# -----------------------------------------------------------------------------
# Parameter init (unpadded, PyTorch-Linear-style uniform) + kernel packing
# -----------------------------------------------------------------------------
def init_params(key):
    params = []

    def linear_params(k, fan_in, fan_out):
        kw, kb = jax.random.split(k)
        bound = 1.0 / math.sqrt(fan_in)
        w = jax.random.uniform(kw, (fan_in, fan_out), jnp.float32, -bound, bound)
        b = jax.random.uniform(kb, (1, fan_out), jnp.float32, -bound, bound)
        return w, b

    keys = jax.random.split(key, TRANSFORMATION_LAYERS + 4)

    for i, (din, dout) in enumerate(TRANSFORMER_DIMS):
        w, b = linear_params(keys[i], din, dout)
        params += [w, b, jnp.ones((1, dout), jnp.float32), jnp.zeros((1, dout), jnp.float32)]

    for j, (din, dout) in enumerate(HEAD_DIMS):
        w, b = linear_params(keys[TRANSFORMATION_LAYERS + j], din, dout)
        params += [w, b]

    return params


def prepare_kernel_params(params, weight_dtype=jnp.bfloat16):
    """Zero-pad every dim to a multiple of 128, cast weights to bf16.

    NB: gamma/beta MUST stay zero-padded — the maskless LayerNorm relies on it.
    """
    def pad2(a, rows, cols):
        return jnp.pad(a, ((0, rows - a.shape[0]), (0, cols - a.shape[1])))

    p = list(params)
    out = []
    for (din, dout) in TRANSFORMER_DIMS:
        w, b, g, be = p[:4]
        p = p[4:]
        pin, pout = _pad128(din), _pad128(dout)
        out += [pad2(w, pin, pout).astype(weight_dtype),
                pad2(b, 1, pout), pad2(g, 1, pout), pad2(be, 1, pout)]
    for (din, dout) in HEAD_DIMS:
        w, b = p[:2]
        p = p[2:]
        out += [pad2(w, _pad128(din), _pad128(dout)).astype(weight_dtype),
                pad2(b, 1, _pad128(dout))]
    return out


# -----------------------------------------------------------------------------
# Wrapper
# -----------------------------------------------------------------------------
def _cost_estimate(padded_b, param_bytes):
    mm = (PAD_BASE * PAD_TDIMS[0][1]
          + PAD_TDIMS[1][0] * PAD_TDIMS[1][1]
          + PAD_TDIMS[2][0] * PAD_TDIMS[2][1]
          + PAD_ENG * PAD_SEL + PAD_SEL * PAD_ENG
          + PAD_ENG * PAD_IMP + PAD_IMP * PAD_ENG)
    flops = 2 * padded_b * mm
    transcendentals = padded_b * (PAD_TDIMS[0][1] + PAD_TDIMS[1][1] + PAD_TDIMS[2][1]
                                  + PAD_SEL + PAD_IMP + 2 * PAD_ENG)
    bytes_accessed = (padded_b * PAD_BASE * 2            # x in (bf16)
                      + 4 * padded_b * PAD_ENG * 4       # 4 f32 outputs
                      + param_bytes)                     # weights (resident)
    return pl.CostEstimate(flops=flops, transcendentals=transcendentals,
                           bytes_accessed=bytes_accessed)


@jax.jit
def automatic_feature_engineer(base_features, kernel_params):
    B = base_features.shape[0]

    # Pick the step count first (avoids round_up(B, tile_b) padding waste),
    # then force >= 2 (even) steps so v7x's two TensorCores both get work and
    # the pipeliner has >= 2 steps to overlap DMA with compute.
    steps = max(2, pl.cdiv(B, MAX_TILE_B))
    if steps % 2:
        steps += 1
    tile_b = _round_up(pl.cdiv(B, steps), 8)     # sublane-aligned batch tile
    padded_b = steps * tile_b

    # bf16 input: halves input DMA bytes, removes the per-step in-kernel cast.
    x = jnp.pad(base_features.astype(jnp.bfloat16),
                ((0, padded_b - B), (0, PAD_BASE - BASE_FEATURE_DIM)))

    grid = (steps,)
    x_spec = pl.BlockSpec((tile_b, PAD_BASE), lambda i: (i, 0))
    # weights / biases: full block, constant index_map -> stay resident in VMEM
    w_specs = [pl.BlockSpec(p.shape, lambda i: (0, 0)) for p in kernel_params]
    out_spec = pl.BlockSpec((tile_b, PAD_ENG), lambda i: (i, 0))

    out_shape = tuple(jax.ShapeDtypeStruct((padded_b, PAD_ENG), jnp.float32)
                      for _ in range(4))

    param_bytes = sum(int(p.size) * p.dtype.itemsize for p in kernel_params)

    eng, sel, imp, raw = pl.pallas_call(
        afe_kernel,
        out_shape=out_shape,
        grid_spec=pltpu.PrefetchScalarGridSpec(
            num_scalar_prefetch=0,
            grid=grid,
            in_specs=[x_spec] + w_specs,
            out_specs=tuple(out_spec for _ in range(4)),
        ),
        compiler_params=pltpu.CompilerParams(
            dimension_semantics=("parallel",),        # shard batch across TCs (v7x)
            vmem_limit_bytes=32 * 1024 * 1024,
        ),
        cost_estimate=_cost_estimate(padded_b, param_bytes),
    )(x, *kernel_params)

    sl = (slice(0, B), slice(0, ENGINEERED_FEATURE_DIM))
    return {
        "engineered_features": eng[sl],
        "selection_weights": sel[sl],
        "importance_weights": imp[sl],
        "raw_transformed": raw[sl],
    }


# -----------------------------------------------------------------------------
# Pure-JAX reference (same math: bf16 matmuls, tanh-approx GELU) for sanity check
# -----------------------------------------------------------------------------
def reference_forward(x, params):
    def linear(h, w, b):
        return jnp.dot(h.astype(jnp.bfloat16), w.astype(jnp.bfloat16),
                       preferred_element_type=jnp.float32) + b

    def layernorm(h, g, be):
        mean = jnp.mean(h, axis=-1, keepdims=True)
        var = jnp.mean((h - mean) ** 2, axis=-1, keepdims=True)
        return (h - mean) * jax.lax.rsqrt(var + LN_EPS) * g + be

    p = list(params)
    h = x
    for _ in range(TRANSFORMATION_LAYERS):
        w, b, g, be = p[:4]
        p = p[4:]
        h = layernorm(_gelu(linear(h, w, b)), g, be)
    ws1, bs1, ws2, bs2, wi1, bi1, wi2, bi2 = p
    sel = jax.nn.sigmoid(linear(_gelu(linear(h, ws1, bs1)), ws2, bs2))
    selected = h * sel
    imp = jax.nn.softmax(linear(_gelu(linear(selected, wi1, bi1)), wi2, bi2), axis=-1)
    return {
        "engineered_features": selected,
        "selection_weights": sel,
        "importance_weights": imp,
        "raw_transformed": h,
    }


if __name__ == "__main__":
    key = jax.random.PRNGKey(0)
    k_param, k_x = jax.random.split(key)

    batch = 8
    x = jax.random.normal(k_x, (batch, BASE_FEATURE_DIM), jnp.float32)
    params = init_params(k_param)
    kernel_params = prepare_kernel_params(params)

    out = automatic_feature_engineer(x, kernel_params)
    jax.block_until_ready(out)

    ref = reference_forward(x, params)
    for name in ("engineered_features", "selection_weights",
                 "importance_weights", "raw_transformed"):
        a, b = out[name], ref[name]
        assert a.shape == b.shape, (name, a.shape, b.shape)
        assert jnp.allclose(a, b, atol=5e-3, rtol=5e-3), (
            name, float(jnp.max(jnp.abs(a - b))))

    print("KERNEL_OK")
</pallas_src>

<mosaic_0001>
module attributes {stable_mosaic.version = 11 : i64} {
  func.func @afe_kernel(%arg0: i32, %arg1: memref<8x128xbf16, #tpu.memory_space<vmem>>, %arg2: memref<128x256xbf16, #tpu.memory_space<vmem>>, %arg3: memref<1x256xf32, #tpu.memory_space<vmem>>, %arg4: memref<1x256xf32, #tpu.memory_space<vmem>>, %arg5: memref<1x256xf32, #tpu.memory_space<vmem>>, %arg6: memref<256x384xbf16, #tpu.memory_space<vmem>>, %arg7: memref<1x384xf32, #tpu.memory_space<vmem>>, %arg8: memref<1x384xf32, #tpu.memory_space<vmem>>, %arg9: memref<1x384xf32, #tpu.memory_space<vmem>>, %arg10: memref<384x128xbf16, #tpu.memory_space<vmem>>, %arg11: memref<1x128xf32, #tpu.memory_space<vmem>>, %arg12: memref<1x128xf32, #tpu.memory_space<vmem>>, %arg13: memref<1x128xf32, #tpu.memory_space<vmem>>, %arg14: memref<128x128xbf16, #tpu.memory_space<vmem>>, %arg15: memref<1x128xf32, #tpu.memory_space<vmem>>, %arg16: memref<128x128xbf16, #tpu.memory_space<vmem>>, %arg17: memref<1x128xf32, #tpu.memory_space<vmem>>, %arg18: memref<128x128xbf16, #tpu.memory_space<vmem>>, %arg19: memref<1x128xf32, #tpu.memory_space<vmem>>, %arg20: memref<128x128xbf16, #tpu.memory_space<vmem>>, %arg21: memref<1x128xf32, #tpu.memory_space<vmem>>, %arg22: memref<8x128xf32, #tpu.memory_space<vmem>>, %arg23: memref<8x128xf32, #tpu.memory_space<vmem>>, %arg24: memref<8x128xf32, #tpu.memory_space<vmem>>, %arg25: memref<8x128xf32, #tpu.memory_space<vmem>>) attributes {dimension_semantics = [#tpu.dimension_semantics<parallel>], iteration_bounds = array<i64: 2>, scalar_prefetch = 0 : i64, scratch_operands = 0 : i64, tpu.core_type = #tpu.core_type<tc>, window_params = [{transform_indices = @transform_0, window_bounds = array<i64: 8, 128>}, {pipeline_mode = #tpu.pipeline_mode<synchronous>, transform_indices = @transform_1, window_bounds = array<i64: 128, 256>}, {pipeline_mode = #tpu.pipeline_mode<synchronous>, transform_indices = @transform_2, window_bounds = array<i64: 1, 256>}, {pipeline_mode = #tpu.pipeline_mode<synchronous>, transform_indices = @transform_3, window_bounds = array<i64: 1, 256>}, {pipeline_mode = #tpu.pipeline_mode<synchronous>, transform_indices = @transform_4, window_bounds = array<i64: 1, 256>}, {pipeline_mode = #tpu.pipeline_mode<synchronous>, transform_indices = @transform_5, window_bounds = array<i64: 256, 384>}, {pipeline_mode = #tpu.pipeline_mode<synchronous>, transform_indices = @transform_6, window_bounds = array<i64: 1, 384>}, {pipeline_mode = #tpu.pipeline_mode<synchronous>, transform_indices = @transform_7, window_bounds = array<i64: 1, 384>}, {pipeline_mode = #tpu.pipeline_mode<synchronous>, transform_indices = @transform_8, window_bounds = array<i64: 1, 384>}, {pipeline_mode = #tpu.pipeline_mode<synchronous>, transform_indices = @transform_9, window_bounds = array<i64: 384, 128>}, {pipeline_mode = #tpu.pipeline_mode<synchronous>, transform_indices = @transform_10, window_bounds = array<i64: 1, 128>}, {pipeline_mode = #tpu.pipeline_mode<synchronous>, transform_indices = @transform_11, window_bounds = array<i64: 1, 128>}, {pipeline_mode = #tpu.pipeline_mode<synchronous>, transform_indices = @transform_12, window_bounds = array<i64: 1, 128>}, {pipeline_mode = #tpu.pipeline_mode<synchronous>, transform_indices = @transform_13, window_bounds = array<i64: 128, 128>}, {pipeline_mode = #tpu.pipeline_mode<synchronous>, transform_indices = @transform_14, window_bounds = array<i64: 1, 128>}, {pipeline_mode = #tpu.pipeline_mode<synchronous>, transform_indices = @transform_15, window_bounds = array<i64: 128, 128>}, {pipeline_mode = #tpu.pipeline_mode<synchronous>, transform_indices = @transform_16, window_bounds = array<i64: 1, 128>}, {pipeline_mode = #tpu.pipeline_mode<synchronous>, transform_indices = @transform_17, window_bounds = array<i64: 128, 128>}, {pipeline_mode = #tpu.pipeline_mode<synchronous>, transform_indices = @transform_18, window_bounds = array<i64: 1, 128>}, {pipeline_mode = #tpu.pipeline_mode<synchronous>, transform_indices = @transform_19, window_bounds = array<i64: 128, 128>}, {pipeline_mode = #tpu.pipeline_mode<synchronous>, transform_indices = @transform_20, window_bounds = array<i64: 1, 128>}, {transform_indices = @transform_21, window_bounds = array<i64: 8, 128>}, {transform_indices = @transform_22, window_bounds = array<i64: 8, 128>}, {transform_indices = @transform_23, window_bounds = array<i64: 8, 128>}, {transform_indices = @transform_24, window_bounds = array<i64: 8, 128>}]} {
    %c0 = arith.constant 0 : index
    %c0_0 = arith.constant 0 : index
    %0 = vector.load %arg1[%c0, %c0_0] : memref<8x128xbf16, #tpu.memory_space<vmem>>, vector<8x128xbf16>
    %c0_1 = arith.constant 0 : index
    %c0_2 = arith.constant 0 : index
    %1 = vector.load %arg2[%c0_1, %c0_2] : memref<128x256xbf16, #tpu.memory_space<vmem>>, vector<128x256xbf16>
    %cst = arith.constant dense<0.000000e+00> : vector<8x256xf32>
    %2 = tpu.matmul %0, %1, %cst {dimension_numbers = #tpu.dot_dimension_numbers<[1], [0], [0], [1], [0, 0, 1, 1], [], []>} : vector<8x128xbf16>, vector<128x256xbf16>, vector<8x256xf32> -> vector<8x256xf32>
    %c0_3 = arith.constant 0 : index
    %c0_4 = arith.constant 0 : index
    %3 = vector.load %arg3[%c0_3, %c0_4] : memref<1x256xf32, #tpu.memory_space<vmem>>, vector<1x256xf32>
    %4 = vector.broadcast %3 : vector<1x256xf32> to vector<8x256xf32>
    %5 = arith.addf %2, %4 : vector<8x256xf32>
    %6 = arith.mulf %5, %5 : vector<8x256xf32>
    %7 = arith.mulf %5, %6 : vector<8x256xf32>
    %cst_5 = arith.constant 4.471500e-02 : f32
    %8 = vector.broadcast %cst_5 : f32 to vector<8x256xf32>
    %9 = arith.mulf %8, %7 : vector<8x256xf32>
    %10 = arith.addf %5, %9 : vector<8x256xf32>
    %cst_6 = arith.constant 0.797884583 : f32
    %11 = vector.broadcast %cst_6 : f32 to vector<8x256xf32>
    %12 = arith.mulf %11, %10 : vector<8x256xf32>
    %13 = math.tanh %12 : vector<8x256xf32>
    %cst_7 = arith.constant 1.000000e+00 : f32
    %14 = vector.broadcast %cst_7 : f32 to vector<8x256xf32>
    %15 = arith.addf %14, %13 : vector<8x256xf32>
    %cst_8 = arith.constant 5.000000e-01 : f32
    %16 = vector.broadcast %cst_8 : f32 to vector<8x256xf32>
    %17 = arith.mulf %16, %15 : vector<8x256xf32>
    %18 = arith.mulf %5, %17 : vector<8x256xf32>
    %c0_9 = arith.constant 0 : index
    %c0_10 = arith.constant 0 : index
    %19 = vector.load %arg4[%c0_9, %c0_10] : memref<1x256xf32, #tpu.memory_space<vmem>>, vector<1x256xf32>
    %c0_11 = arith.constant 0 : index
    %c0_12 = arith.constant 0 : index
    %20 = vector.load %arg5[%c0_11, %c0_12] : memref<1x256xf32, #tpu.memory_space<vmem>>, vector<1x256xf32>
    %cst_13 = arith.constant dense<0.000000e+00> : vector<8xf32>
    %21 = vector.multi_reduction <add>, %18, %cst_13 [1] : vector<8x256xf32> to vector<8xf32>
    %22 = vector.shape_cast %21 : vector<8xf32> to vector<8x1xf32>
    %cst_14 = arith.constant 5.000000e-03 : f32
    %23 = vector.broadcast %cst_14 : f32 to vector<8x1xf32>
    %24 = arith.mulf %22, %23 : vector<8x1xf32>
    %25 = arith.mulf %18, %18 : vector<8x256xf32>
    %cst_15 = arith.constant dense<0.000000e+00> : vector<8xf32>
    %26 = vector.multi_reduction <add>, %25, %cst_15 [1] : vector<8x256xf32> to vector<8xf32>
    %27 = vector.shape_cast %26 : vector<8xf32> to vector<8x1xf32>
    %cst_16 = arith.constant 5.000000e-03 : f32
    %28 = vector.broadcast %cst_16 : f32 to vector<8x1xf32>
    %29 = arith.mulf %27, %28 : vector<8x1xf32>
    %30 = arith.mulf %24, %24 : vector<8x1xf32>
    %31 = arith.subf %29, %30 : vector<8x1xf32>
    %32 = vector.broadcast %24 : vector<8x1xf32> to vector<8x256xf32>
    %33 = arith.subf %18, %32 : vector<8x256xf32>
    %cst_17 = arith.constant 9.99999974E-6 : f32
    %34 = vector.broadcast %cst_17 : f32 to vector<8x1xf32>
    %35 = arith.addf %31, %34 : vector<8x1xf32>
    %36 = math.rsqrt %35 : vector<8x1xf32>
    %37 = vector.broadcast %36 : vector<8x1xf32> to vector<8x256xf32>
    %38 = arith.mulf %33, %37 : vector<8x256xf32>
    %39 = vector.broadcast %19 : vector<1x256xf32> to vector<8x256xf32>
    %40 = arith.mulf %38, %39 : vector<8x256xf32>
    %41 = vector.broadcast %20 : vector<1x256xf32> to vector<8x256xf32>
    %42 = arith.addf %40, %41 : vector<8x256xf32>
    %43 = arith.truncf %42 : vector<8x256xf32> to vector<8x256xbf16>
    %c0_18 = arith.constant 0 : index
    %c0_19 = arith.constant 0 : index
    %44 = vector.load %arg6[%c0_18, %c0_19] : memref<256x384xbf16, #tpu.memory_space<vmem>>, vector<256x384xbf16>
    %cst_20 = arith.constant dense<0.000000e+00> : vector<8x384xf32>
    %45 = tpu.matmul %43, %44, %cst_20 {dimension_numbers = #tpu.dot_dimension_numbers<[1], [0], [0], [1], [0, 0, 1, 1], [], []>} : vector<8x256xbf16>, vector<256x384xbf16>, vector<8x384xf32> -> vector<8x384xf32>
    %c0_21 = arith.constant 0 : index
    %c0_22 = arith.constant 0 : index
    %46 = vector.load %arg7[%c0_21, %c0_22] : memref<1x384xf32, #tpu.memory_space<vmem>>, vector<1x384xf32>
    %47 = vector.broadcast %46 : vector<1x384xf32> to vector<8x384xf32>
    %48 = arith.addf %45, %47 : vector<8x384xf32>
    %49 = arith.mulf %48, %48 : vector<8x384xf32>
    %50 = arith.mulf %48, %49 : vector<8x384xf32>
    %cst_23 = arith.constant 4.471500e-02 : f32
    %51 = vector.broadcast %cst_23 : f32 to vector<8x384xf32>
    %52 = arith.mulf %51, %50 : vector<8x384xf32>
    %53 = arith.addf %48, %52 : vector<8x384xf32>
    %cst_24 = arith.constant 0.797884583 : f32
    %54 = vector.broadcast %cst_24 : f32 to vector<8x384xf32>
    %55 = arith.mulf %54, %53 : vector<8x384xf32>
    %56 = math.tanh %55 : vector<8x384xf32>
    %cst_25 = arith.constant 1.000000e+00 : f32
    %57 = vector.broadcast %cst_25 : f32 to vector<8x384xf32>
    %58 = arith.addf %57, %56 : vector<8x384xf32>
    %cst_26 = arith.constant 5.000000e-01 : f32
    %59 = vector.broadcast %cst_26 : f32 to vector<8x384xf32>
    %60 = arith.mulf %59, %58 : vector<8x384xf32>
    %61 = arith.mulf %48, %60 : vector<8x384xf32>
    %c0_27 = arith.constant 0 : index
    %c0_28 = arith.constant 0 : index
    %62 = vector.load %arg8[%c0_27, %c0_28] : memref<1x384xf32, #tpu.memory_space<vmem>>, vector<1x384xf32>
    %c0_29 = arith.constant 0 : index
    %c0_30 = arith.constant 0 : index
    %63 = vector.load %arg9[%c0_29, %c0_30] : memref<1x384xf32, #tpu.memory_space<vmem>>, vector<1x384xf32>
    %cst_31 = arith.constant dense<0.000000e+00> : vector<8xf32>
    %64 = vector.multi_reduction <add>, %61, %cst_31 [1] : vector<8x384xf32> to vector<8xf32>
    %65 = vector.shape_cast %64 : vector<8xf32> to vector<8x1xf32>
    %cst_32 = arith.constant 0.00260416674 : f32
    %66 = vector.broadcast %cst_32 : f32 to vector<8x1xf32>
    %67 = arith.mulf %65, %66 : vector<8x1xf32>
    %68 = arith.mulf %61, %61 : vector<8x384xf32>
    %cst_33 = arith.constant dense<0.000000e+00> : vector<8xf32>
    %69 = vector.multi_reduction <add>, %68, %cst_33 [1] : vector<8x384xf32> to vector<8xf32>
    %70 = vector.shape_cast %69 : vector<8xf32> to vector<8x1xf32>
    %cst_34 = arith.constant 0.00260416674 : f32
    %71 = vector.broadcast %cst_34 : f32 to vector<8x1xf32>
    %72 = arith.mulf %70, %71 : vector<8x1xf32>
    %73 = arith.mulf %67, %67 : vector<8x1xf32>
    %74 = arith.subf %72, %73 : vector<8x1xf32>
    %75 = vector.broadcast %67 : vector<8x1xf32> to vector<8x384xf32>
    %76 = arith.subf %61, %75 : vector<8x384xf32>
    %cst_35 = arith.constant 9.99999974E-6 : f32
    %77 = vector.broadcast %cst_35 : f32 to vector<8x1xf32>
    %78 = arith.addf %74, %77 : vector<8x1xf32>
    %79 = math.rsqrt %78 : vector<8x1xf32>
    %80 = vector.broadcast %79 : vector<8x1xf32> to vector<8x384xf32>
    %81 = arith.mulf %76, %80 : vector<8x384xf32>
    %82 = vector.broadcast %62 : vector<1x384xf32> to vector<8x384xf32>
    %83 = arith.mulf %81, %82 : vector<8x384xf32>
    %84 = vector.broadcast %63 : vector<1x384xf32> to vector<8x384xf32>
    %85 = arith.addf %83, %84 : vector<8x384xf32>
    %86 = arith.truncf %85 : vector<8x384xf32> to vector<8x384xbf16>
    %c0_36 = arith.constant 0 : index
    %c0_37 = arith.constant 0 : index
    %87 = vector.load %arg10[%c0_36, %c0_37] : memref<384x128xbf16, #tpu.memory_space<vmem>>, vector<384x128xbf16>
    %cst_38 = arith.constant dense<0.000000e+00> : vector<8x128xf32>
    %88 = tpu.matmul %86, %87, %cst_38 {dimension_numbers = #tpu.dot_dimension_numbers<[1], [0], [0], [1], [0, 0, 1, 1], [], []>} : vector<8x384xbf16>, vector<384x128xbf16>, vector<8x128xf32> -> vector<8x128xf32>
    %c0_39 = arith.constant 0 : index
    %c0_40 = arith.constant 0 : index
    %89 = vector.load %arg11[%c0_39, %c0_40] : memref<1x128xf32, #tpu.memory_space<vmem>>, vector<1x128xf32>
    %90 = vector.broadcast %89 : vector<1x128xf32> to vector<8x128xf32>
    %91 = arith.addf %88, %90 : vector<8x128xf32>
    %92 = arith.mulf %91, %91 : vector<8x128xf32>
    %93 = arith.mulf %91, %92 : vector<8x128xf32>
    %cst_41 = arith.constant 4.471500e-02 : f32
    %94 = vector.broadcast %cst_41 : f32 to vector<8x128xf32>
    %95 = arith.mulf %94, %93 : vector<8x128xf32>
    %96 = arith.addf %91, %95 : vector<8x128xf32>
    %cst_42 = arith.constant 0.797884583 : f32
    %97 = vector.broadcast %cst_42 : f32 to vector<8x128xf32>
    %98 = arith.mulf %97, %96 : vector<8x128xf32>
    %99 = math.tanh %98 : vector<8x128xf32>
    %cst_43 = arith.constant 1.000000e+00 : f32
    %100 = vector.broadcast %cst_43 : f32 to vector<8x128xf32>
    %101 = arith.addf %100, %99 : vector<8x128xf32>
    %cst_44 = arith.constant 5.000000e-01 : f32
    %102 = vector.broadcast %cst_44 : f32 to vector<8x128xf32>
    %103 = arith.mulf %102, %101 : vector<8x128xf32>
    %104 = arith.mulf %91, %103 : vector<8x128xf32>
    %c0_45 = arith.constant 0 : index
    %c0_46 = arith.constant 0 : index
    %105 = vector.load %arg12[%c0_45, %c0_46] : memref<1x128xf32, #tpu.memory_space<vmem>>, vector<1x128xf32>
    %c0_47 = arith.constant 0 : index
    %c0_48 = arith.constant 0 : index
    %106 = vector.load %arg13[%c0_47, %c0_48] : memref<1x128xf32, #tpu.memory_space<vmem>>, vector<1x128xf32>
    %cst_49 = arith.constant dense<0.000000e+00> : vector<8xf32>
    %107 = vector.multi_reduction <add>, %104, %cst_49 [1] : vector<8x128xf32> to vector<8xf32>
    %108 = vector.shape_cast %107 : vector<8xf32> to vector<8x1xf32>
    %cst_50 = arith.constant 2.000000e-02 : f32
    %109 = vector.broadcast %cst_50 : f32 to vector<8x1xf32>
    %110 = arith.mulf %108, %109 : vector<8x1xf32>
    %111 = arith.mulf %104, %104 : vector<8x128xf32>
    %cst_51 = arith.constant dense<0.000000e+00> : vector<8xf32>
    %112 = vector.multi_reduction <add>, %111, %cst_51 [1] : vector<8x128xf32> to vector<8xf32>
    %113 = vector.shape_cast %112 : vector<8xf32> to vector<8x1xf32>
    %cst_52 = arith.constant 2.000000e-02 : f32
    %114 = vector.broadcast %cst_52 : f32 to vector<8x1xf32>
    %115 = arith.mulf %113, %114 : vector<8x1xf32>
    %116 = arith.mulf %110, %110 : vector<8x1xf32>
    %117 = arith.subf %115, %116 : vector<8x1xf32>
    %118 = vector.broadcast %110 : vector<8x1xf32> to vector<8x128xf32>
    %119 = arith.subf %104, %118 : vector<8x128xf32>
    %cst_53 = arith.constant 9.99999974E-6 : f32
    %120 = vector.broadcast %cst_53 : f32 to vector<8x1xf32>
    %121 = arith.addf %117, %120 : vector<8x1xf32>
    %122 = math.rsqrt %121 : vector<8x1xf32>
    %123 = vector.broadcast %122 : vector<8x1xf32> to vector<8x128xf32>
    %124 = arith.mulf %119, %123 : vector<8x128xf32>
    %125 = vector.broadcast %105 : vector<1x128xf32> to vector<8x128xf32>
    %126 = arith.mulf %124, %125 : vector<8x128xf32>
    %127 = vector.broadcast %106 : vector<1x128xf32> to vector<8x128xf32>
    %128 = arith.addf %126, %127 : vector<8x128xf32>
    %129 = arith.truncf %128 : vector<8x128xf32> to vector<8x128xbf16>
    %c0_54 = arith.constant 0 : index
    %c0_55 = arith.constant 0 : index
    %130 = vector.load %arg14[%c0_54, %c0_55] : memref<128x128xbf16, #tpu.memory_space<vmem>>, vector<128x128xbf16>
    %cst_56 = arith.constant dense<0.000000e+00> : vector<8x128xf32>
    %131 = tpu.matmul %129, %130, %cst_56 {dimension_numbers = #tpu.dot_dimension_numbers<[1], [0], [0], [1], [0, 0, 1, 1], [], []>} : vector<8x128xbf16>, vector<128x128xbf16>, vector<8x128xf32> -> vector<8x128xf32>
    %c0_57 = arith.constant 0 : index
    %c0_58 = arith.constant 0 : index
    %132 = vector.load %arg15[%c0_57, %c0_58] : memref<1x128xf32, #tpu.memory_space<vmem>>, vector<1x128xf32>
    %133 = vector.broadcast %132 : vector<1x128xf32> to vector<8x128xf32>
    %134 = arith.addf %131, %133 : vector<8x128xf32>
    %135 = arith.mulf %134, %134 : vector<8x128xf32>
    %136 = arith.mulf %134, %135 : vector<8x128xf32>
    %cst_59 = arith.constant 4.471500e-02 : f32
    %137 = vector.broadcast %cst_59 : f32 to vector<8x128xf32>
    %138 = arith.mulf %137, %136 : vector<8x128xf32>
    %139 = arith.addf %134, %138 : vector<8x128xf32>
    %cst_60 = arith.constant 0.797884583 : f32
    %140 = vector.broadcast %cst_60 : f32 to vector<8x128xf32>
    %141 = arith.mulf %140, %139 : vector<8x128xf32>
    %142 = math.tanh %141 : vector<8x128xf32>
    %cst_61 = arith.constant 1.000000e+00 : f32
    %143 = vector.broadcast %cst_61 : f32 to vector<8x128xf32>
    %144 = arith.addf %143, %142 : vector<8x128xf32>
    %cst_62 = arith.constant 5.000000e-01 : f32
    %145 = vector.broadcast %cst_62 : f32 to vector<8x128xf32>
    %146 = arith.mulf %145, %144 : vector<8x128xf32>
    %147 = arith.mulf %134, %146 : vector<8x128xf32>
    %148 = arith.truncf %147 : vector<8x128xf32> to vector<8x128xbf16>
    %c0_63 = arith.constant 0 : index
    %c0_64 = arith.constant 0 : index
    %149 = vector.load %arg16[%c0_63, %c0_64] : memref<128x128xbf16, #tpu.memory_space<vmem>>, vector<128x128xbf16>
    %cst_65 = arith.constant dense<0.000000e+00> : vector<8x128xf32>
    %150 = tpu.matmul %148, %149, %cst_65 {dimension_numbers = #tpu.dot_dimension_numbers<[1], [0], [0], [1], [0, 0, 1, 1], [], []>} : vector<8x128xbf16>, vector<128x128xbf16>, vector<8x128xf32> -> vector<8x128xf32>
    %c0_66 = arith.constant 0 : index
    %c0_67 = arith.constant 0 : index
    %151 = vector.load %arg17[%c0_66, %c0_67] : memref<1x128xf32, #tpu.memory_space<vmem>>, vector<1x128xf32>
    %152 = vector.broadcast %151 : vector<1x128xf32> to vector<8x128xf32>
    %153 = arith.addf %150, %152 : vector<8x128xf32>
    %154 = arith.negf %153 : vector<8x128xf32>
    %155 = math.exp %154 : vector<8x128xf32>
    %cst_68 = arith.constant 1.000000e+00 : f32
    %156 = vector.broadcast %cst_68 : f32 to vector<8x128xf32>
    %157 = arith.addf %156, %155 : vector<8x128xf32>
    %158 = arith.divf %156, %157 : vector<8x128xf32>
    %159 = arith.mulf %128, %158 : vector<8x128xf32>
    %160 = arith.truncf %159 : vector<8x128xf32> to vector<8x128xbf16>
    %c0_69 = arith.constant 0 : index
    %c0_70 = arith.constant 0 : index
    %161 = vector.load %arg18[%c0_69, %c0_70] : memref<128x128xbf16, #tpu.memory_space<vmem>>, vector<128x128xbf16>
    %cst_71 = arith.constant dense<0.000000e+00> : vector<8x128xf32>
    %162 = tpu.matmul %160, %161, %cst_71 {dimension_numbers = #tpu.dot_dimension_numbers<[1], [0], [0], [1], [0, 0, 1, 1], [], []>} : vector<8x128xbf16>, vector<128x128xbf16>, vector<8x128xf32> -> vector<8x128xf32>
    %c0_72 = arith.constant 0 : index
    %c0_73 = arith.constant 0 : index
    %163 = vector.load %arg19[%c0_72, %c0_73] : memref<1x128xf32, #tpu.memory_space<vmem>>, vector<1x128xf32>
    %164 = vector.broadcast %163 : vector<1x128xf32> to vector<8x128xf32>
    %165 = arith.addf %162, %164 : vector<8x128xf32>
    %166 = arith.mulf %165, %165 : vector<8x128xf32>
    %167 = arith.mulf %165, %166 : vector<8x128xf32>
    %cst_74 = arith.constant 4.471500e-02 : f32
    %168 = vector.broadcast %cst_74 : f32 to vector<8x128xf32>
    %169 = arith.mulf %168, %167 : vector<8x128xf32>
    %170 = arith.addf %165, %169 : vector<8x128xf32>
    %cst_75 = arith.constant 0.797884583 : f32
    %171 = vector.broadcast %cst_75 : f32 to vector<8x128xf32>
    %172 = arith.mulf %171, %170 : vector<8x128xf32>
    %173 = math.tanh %172 : vector<8x128xf32>
    %cst_76 = arith.constant 1.000000e+00 : f32
    %174 = vector.broadcast %cst_76 : f32 to vector<8x128xf32>
    %175 = arith.addf %174, %173 : vector<8x128xf32>
    %cst_77 = arith.constant 5.000000e-01 : f32
    %176 = vector.broadcast %cst_77 : f32 to vector<8x128xf32>
    %177 = arith.mulf %176, %175 : vector<8x128xf32>
    %178 = arith.mulf %165, %177 : vector<8x128xf32>
    %179 = arith.truncf %178 : vector<8x128xf32> to vector<8x128xbf16>
    %c0_78 = arith.constant 0 : index
    %c0_79 = arith.constant 0 : index
    %180 = vector.load %arg20[%c0_78, %c0_79] : memref<128x128xbf16, #tpu.memory_space<vmem>>, vector<128x128xbf16>
    %cst_80 = arith.constant dense<0.000000e+00> : vector<8x128xf32>
    %181 = tpu.matmul %179, %180, %cst_80 {dimension_numbers = #tpu.dot_dimension_numbers<[1], [0], [0], [1], [0, 0, 1, 1], [], []>} : vector<8x128xbf16>, vector<128x128xbf16>, vector<8x128xf32> -> vector<8x128xf32>
    %c0_81 = arith.constant 0 : index
    %c0_82 = arith.constant 0 : index
    %182 = vector.load %arg21[%c0_81, %c0_82] : memref<1x128xf32, #tpu.memory_space<vmem>>, vector<1x128xf32>
    %183 = vector.broadcast %182 : vector<1x128xf32> to vector<8x128xf32>
    %184 = arith.addf %181, %183 : vector<8x128xf32>
    %185 = tpu.iota {dimensions = array<i32: 1>} : vector<1x128xi32>
    %c50_i32 = arith.constant 50 : i32
    %186 = vector.broadcast %c50_i32 : i32 to vector<1x128xi32>
    %187 = arith.cmpi slt, %185, %186 : vector<1x128xi32>
    %cst_83 = arith.constant -1.000000e+30 : f32
    %188 = vector.shape_cast %187 : vector<1x128xi1> to vector<1x128xi1>
    %189 = vector.broadcast %188 : vector<1x128xi1> to vector<8x128xi1>
    %190 = vector.broadcast %cst_83 : f32 to vector<8x128xf32>
    %191 = arith.select %189, %184, %190 : vector<8x128xi1>, vector<8x128xf32>
    %cst_84 = arith.constant dense<0xFF800000> : vector<8xf32>
    %192 = vector.multi_reduction <maximumf>, %191, %cst_84 [1] : vector<8x128xf32> to vector<8xf32>
    %193 = vector.shape_cast %192 : vector<8xf32> to vector<8x1xf32>
    %194 = vector.broadcast %193 : vector<8x1xf32> to vector<8x128xf32>
    %195 = arith.subf %191, %194 : vector<8x128xf32>
    %196 = math.exp %195 : vector<8x128xf32>
    %cst_85 = arith.constant 0.000000e+00 : f32
    %197 = vector.shape_cast %187 : vector<1x128xi1> to vector<1x128xi1>
    %198 = vector.broadcast %197 : vector<1x128xi1> to vector<8x128xi1>
    %199 = vector.broadcast %cst_85 : f32 to vector<8x128xf32>
    %200 = arith.select %198, %196, %199 : vector<8x128xi1>, vector<8x128xf32>
    %cst_86 = arith.constant dense<0.000000e+00> : vector<8xf32>
    %201 = vector.multi_reduction <add>, %200, %cst_86 [1] : vector<8x128xf32> to vector<8xf32>
    %202 = vector.shape_cast %201 : vector<8xf32> to vector<8x1xf32>
    %203 = tpu.reciprocal %202 {approx = true} : vector<8x1xf32> -> vector<8x1xf32>
    %204 = vector.broadcast %203 : vector<8x1xf32> to vector<8x128xf32>
    %205 = arith.mulf %200, %204 : vector<8x128xf32>
    %c0_87 = arith.constant 0 : index
    %c0_88 = arith.constant 0 : index
    %206 = vector.load %arg22[%c0_87, %c0_88] : memref<8x128xf32, #tpu.memory_space<vmem>>, vector<8x128xf32>
    tpu.vector_store %arg22[%c0_87, %c0_88], %159 {strides = array<i32>} : memref<8x128xf32, #tpu.memory_space<vmem>>, vector<8x128xf32>,
    %c0_89 = arith.constant 0 : index
    %c0_90 = arith.constant 0 : index
    %207 = vector.load %arg23[%c0_89, %c0_90] : memref<8x128xf32, #tpu.memory_space<vmem>>, vector<8x128xf32>
    tpu.vector_store %arg23[%c0_89, %c0_90], %158 {strides = array<i32>} : memref<8x128xf32, #tpu.memory_space<vmem>>, vector<8x128xf32>,
    %c0_91 = arith.constant 0 : index
    %c0_92 = arith.constant 0 : index
    %208 = vector.load %arg24[%c0_91, %c0_92] : memref<8x128xf32, #tpu.memory_space<vmem>>, vector<8x128xf32>
    tpu.vector_store %arg24[%c0_91, %c0_92], %205 {strides = array<i32>} : memref<8x128xf32, #tpu.memory_space<vmem>>, vector<8x128xf32>,
    %c0_93 = arith.constant 0 : index
    %c0_94 = arith.constant 0 : index
    %209 = vector.load %arg25[%c0_93, %c0_94] : memref<8x128xf32, #tpu.memory_space<vmem>>, vector<8x128xf32>
    tpu.vector_store %arg25[%c0_93, %c0_94], %128 {strides = array<i32>} : memref<8x128xf32, #tpu.memory_space<vmem>>, vector<8x128xf32>,
    return
  }
  func.func @transform_0(%arg0: i32) -> (i32, i32) {
    %c0_i32 = arith.constant 0 : i32
    %c0_i32_0 = arith.constant 0 : i32
    return %arg0, %c0_i32 : i32, i32
  }
  func.func @transform_1(%arg0: i32) -> (i32, i32) {
    %c0_i32 = arith.constant 0 : i32
    %c0_i32_0 = arith.constant 0 : i32
    %c0_i32_1 = arith.constant 0 : i32
    return %c0_i32, %c0_i32_0 : i32, i32
  }
  func.func @transform_2(%arg0: i32) -> (i32, i32) {
    %c0_i32 = arith.constant 0 : i32
    %c0_i32_0 = arith.constant 0 : i32
    %c0_i32_1 = arith.constant 0 : i32
    return %c0_i32, %c0_i32_0 : i32, i32
  }
  func.func @transform_3(%arg0: i32) -> (i32, i32) {
    %c0_i32 = arith.constant 0 : i32
    %c0_i32_0 = arith.constant 0 : i32
    %c0_i32_1 = arith.constant 0 : i32
    return %c0_i32, %c0_i32_0 : i32, i32
  }
  func.func @transform_4(%arg0: i32) -> (i32, i32) {
    %c0_i32 = arith.constant 0 : i32
    %c0_i32_0 = arith.constant 0 : i32
    %c0_i32_1 = arith.constant 0 : i32
    return %c0_i32, %c0_i32_0 : i32, i32
  }
  func.func @transform_5(%arg0: i32) -> (i32, i32) {
    %c0_i32 = arith.constant 0 : i32
    %c0_i32_0 = arith.constant 0 : i32
    %c0_i32_1 = arith.constant 0 : i32
    return %c0_i32, %c0_i32_0 : i32, i32
  }
  func.func @transform_6(%arg0: i32) -> (i32, i32) {
    %c0_i32 = arith.constant 0 : i32
    %c0_i32_0 = arith.constant 0 : i32
    %c0_i32_1 = arith.constant 0 : i32
    return %c0_i32, %c0_i32_0 : i32, i32
  }
  func.func @transform_7(%arg0: i32) -> (i32, i32) {
    %c0_i32 = arith.constant 0 : i32
    %c0_i32_0 = arith.constant 0 : i32
    %c0_i32_1 = arith.constant 0 : i32
    return %c0_i32, %c0_i32_0 : i32, i32
  }
  func.func @transform_8(%arg0: i32) -> (i32, i32) {
    %c0_i32 = arith.constant 0 : i32
    %c0_i32_0 = arith.constant 0 : i32
    %c0_i32_1 = arith.constant 0 : i32
    return %c0_i32, %c0_i32_0 : i32, i32
  }
  func.func @transform_9(%arg0: i32) -> (i32, i32) {
    %c0_i32 = arith.constant 0 : i32
    %c0_i32_0 = arith.constant 0 : i32
    %c0_i32_1 = arith.constant 0 : i32
    return %c0_i32, %c0_i32_0 : i32, i32
  }
  func.func @transform_10(%arg0: i32) -> (i32, i32) {
    %c0_i32 = arith.constant 0 : i32
    %c0_i32_0 = arith.constant 0 : i32
    %c0_i32_1 = arith.constant 0 : i32
    return %c0_i32, %c0_i32_0 : i32, i32
  }
  func.func @transform_11(%arg0: i32) -> (i32, i32) {
    %c0_i32 = arith.constant 0 : i32
    %c0_i32_0 = arith.constant 0 : i32
    %c0_i32_1 = arith.constant 0 : i32
    return %c0_i32, %c0_i32_0 : i32, i32
  }
  func.func @transform_12(%arg0: i32) -> (i32, i32) {
    %c0_i32 = arith.constant 0 : i32
    %c0_i32_0 = arith.constant 0 : i32
    %c0_i32_1 = arith.constant 0 : i32
    return %c0_i32, %c0_i32_0 : i32, i32
  }
  func.func @transform_13(%arg0: i32) -> (i32, i32) {
    %c0_i32 = arith.constant 0 : i32
    %c0_i32_0 = arith.constant 0 : i32
    %c0_i32_1 = arith.constant 0 : i32
    return %c0_i32, %c0_i32_0 : i32, i32
  }
  func.func @transform_14(%arg0: i32) -> (i32, i32) {
    %c0_i32 = arith.constant 0 : i32
    %c0_i32_0 = arith.constant 0 : i32
    %c0_i32_1 = arith.constant 0 : i32
    return %c0_i32, %c0_i32_0 : i32, i32
  }
  func.func @transform_15(%arg0: i32) -> (i32, i32) {
    %c0_i32 = arith.constant 0 : i32
    %c0_i32_0 = arith.constant 0 : i32
    %c0_i32_1 = arith.constant 0 : i32
    return %c0_i32, %c0_i32_0 : i32, i32
  }
  func.func @transform_16(%arg0: i32) -> (i32, i32) {
    %c0_i32 = arith.constant 0 : i32
    %c0_i32_0 = arith.constant 0 : i32
    %c0_i32_1 = arith.constant 0 : i32
    return %c0_i32, %c0_i32_0 : i32, i32
  }
  func.func @transform_17(%arg0: i32) -> (i32, i32) {
    %c0_i32 = arith.constant 0 : i32
    %c0_i32_0 = arith.constant 0 : i32
    %c0_i32_1 = arith.constant 0 : i32
    return %c0_i32, %c0_i32_0 : i32, i32
  }
  func.func @transform_18(%arg0: i32) -> (i32, i32) {
    %c0_i32 = arith.constant 0 : i32
    %c0_i32_0 = arith.constant 0 : i32
    %c0_i32_1 = arith.constant 0 : i32
    return %c0_i32, %c0_i32_0 : i32, i32
  }
  func.func @transform_19(%arg0: i32) -> (i32, i32) {
    %c0_i32 = arith.constant 0 : i32
    %c0_i32_0 = arith.constant 0 : i32
    %c0_i32_1 = arith.constant 0 : i32
    return %c0_i32, %c0_i32_0 : i32, i32
  }
  func.func @transform_20(%arg0: i32) -> (i32, i32) {
    %c0_i32 = arith.constant 0 : i32
    %c0_i32_0 = arith.constant 0 : i32
    %c0_i32_1 = arith.constant 0 : i32
    return %c0_i32, %c0_i32_0 : i32, i32
  }
  func.func @transform_21(%arg0: i32) -> (i32, i32) {
    %c0_i32 = arith.constant 0 : i32
    %c0_i32_0 = arith.constant 0 : i32
    return %arg0, %c0_i32 : i32, i32
  }
  func.func @transform_22(%arg0: i32) -> (i32, i32) {
    %c0_i32 = arith.constant 0 : i32
    %c0_i32_0 = arith.constant 0 : i32
    return %arg0, %c0_i32 : i32, i32
  }
  func.func @transform_23(%arg0: i32) -> (i32, i32) {
    %c0_i32 = arith.constant 0 : i32
    %c0_i32_0 = arith.constant 0 : i32
    return %arg0, %c0_i32 : i32, i32
  }
  func.func @transform_24(%arg0: i32) -> (i32, i32) {
    %c0_i32 = arith.constant 0 : i32
    %c0_i32_0 = arith.constant 0 : i32
    return %arg0, %c0_i32 : i32, i32
  }
}

</mosaic_0001>

<bundles_post_ra>
// kernel: automatic_feature_engineer.1
= control target key start
LH: loop header
LB: loop body
LE: loop exit
PB: predicated region body
PF: predicated region fallthrough
CT: control target
= control target key end

     0   :  { %s4324_s0 = inlined_call_operand.vmem [shape: bf16[16,128], index: 0, kind: input, shape index: {}]   ;;  %s4325_s1 = inlined_call_operand.hbm [shape: bf16[128,256], index: 1, kind: input, shape index: {}]   ;;  %s4326_s2 = inlined_call_operand.hbm [shape: f32[1,256], index: 2, kind: input, shape index: {}]   ;;  %s4327_s3 = inlined_call_operand.hbm [shape: f32[1,256], index: 3, kind: input, shape index: {}]   ;;  %s4328_s4 = inlined_call_operand.hbm [shape: f32[1,256], index: 4, kind: input, shape index: {}]   ;;  %s4329_s5 = inlined_call_operand.hbm [shape: bf16[256,384], index: 5, kind: input, shape index: {}]   ;;  %s4330_s6 = inlined_call_operand.vmem [shape: f32[1,384], index: 6, kind: input, shape index: {}]   ;;  %s4331_s7 = inlined_call_operand.vmem [shape: f32[1,384], index: 7, kind: input, shape index: {}]   ;;  %s4332_s8 = inlined_call_operand.vmem [shape: f32[1,384], index: 8, kind: input, shape index: {}]   ;;  %s4333_s9 = inlined_call_operand.hbm [shape: bf16[384,128], index: 9, kind: input, shape index: {}]   ;;  %s4334_s10 = inlined_call_operand.vmem [shape: f32[1,128], index: 10, kind: input, shape index: {}]   ;;  %s4335_s11 = inlined_call_operand.hbm [shape: f32[1,128], index: 11, kind: input, shape index: {}]   ;;  %s4336_s12 = inlined_call_operand.hbm [shape: f32[1,128], index: 12, kind: input, shape index: {}]   ;;  %s4337_s13 = inlined_call_operand.vmem [shape: bf16[128,128], index: 13, kind: input, shape index: {}]   ;;  %s4338_s14 = inlined_call_operand.vmem [shape: f32[1,128], index: 14, kind: input, shape index: {}]   ;;  %s4339_s15 = inlined_call_operand.hbm [shape: bf16[128,128], index: 15, kind: input, shape index: {}]   ;;  %s4340_s16 = inlined_call_operand.vmem [shape: f32[1,128], index: 16, kind: input, shape index: {}]   ;;  %s4341_s17 = inlined_call_operand.hbm [shape: bf16[128,128], index: 17, kind: input, shape index: {}]   ;;  %s4342_s18 = inlined_call_operand.vmem [shape: f32[1,128], index: 18, kind: input, shape index: {}]   ;;  %s4343_s19 = inlined_call_operand.hbm [shape: bf16[128,128], index: 19, kind: input, shape index: {}]   ;;  %s4344_s20 = inlined_call_operand.vmem [shape: f32[1,128], index: 20, kind: input, shape index: {}]   ;;  %s4345_s21 = inlined_call_operand.vmem [shape: f32[16,128], index: 21, kind: output, shape index: {0}]   ;;  %s4346_s22 = inlined_call_operand.vmem [shape: f32[16,128], index: 22, kind: output, shape index: {1}]   ;;  %s4347_s23 = inlined_call_operand.vmem [shape: f32[16,128], index: 23, kind: output, shape index: {2}]   ;;  %s4348_s24 = inlined_call_operand.vmem [shape: f32[16,128], index: 24, kind: output, shape index: {3}]  }
   0x1   :  { %4364 = sst [smem:[#allocation26_spill]] %s4324_s0 }
   0x2   :  { %4365 = sst [smem:[#allocation27_spill]] %s4325_s1 }
   0x3   :  { %4366 = sst [smem:[#allocation28_spill]] %s4326_s2 }
   0x4   :  { %4367 = sst [smem:[#allocation29_spill]] %s4327_s3 }
   0x5   :  { %4368 = sst [smem:[#allocation30_spill]] %s4328_s4 }
   0x6   :  { %4369 = sst [smem:[#allocation31_spill]] %s4329_s5 }
   0x7   :  { %4370 = sst [smem:[#allocation32_spill]] %s4330_s6 }
   0x8   :  { %4371 = sst [smem:[#allocation33_spill]] %s4331_s7 }
   0x9   :  { %4372 = sst [smem:[#allocation34_spill]] %s4332_s8 }
   0xa   :  { %4373 = sst [smem:[#allocation35_spill]] %s4333_s9 }
   0xb   :  { %4374 = sst [smem:[#allocation36_spill]] %s4336_s12 }
   0xc   :  { %4375 = sst [smem:[#allocation37_spill]] %s4340_s16 }
   0xd   :  { %4376 = sst [smem:[#allocation38_spill]] %s4341_s17 }
   0xe   :  { %4377 = sst [smem:[#allocation39_spill]] %s4342_s18 }
   0xf   :  { %4378 = sst [smem:[#allocation40_spill]] %s4344_s20 }
  0x10   :  { %4379 = sst [smem:[#allocation41_spill]] %s4345_s21 }
  0x11   :  { %4380 = sst [smem:[#allocation42_spill]] %s4346_s22 }
  0x12   :  { %4381 = sst [smem:[#allocation43_spill]] %s4347_s23 }
  0x13   :  { %30 = vsyncpa [#allocation3], 0 }
  0x14   :  { %31 = vsyncpa [#allocation5], 0 }
  0x15   :  { %32 = vsyncpa [#allocation8], 0 }
  0x16   :  { %33 = vsyncpa [#allocation11], 0 }
  0x17   :  { %34 = vsyncpa [#allocation14], 0 }
  0x18   :  { %35 = vsyncpa [#allocation17], 0  ;;  %s3843_s5 = smov 0  }
  0x19 LB: > { %4382 = sst [smem:[#allocation25_spill]] %s3696_s5  ;;  %s3698_s26 = smov [#allocation4]   ;;  %s3696_s5 = sphi %s3843_s5, %s41_s5  }
  0x1a   : > { %s622_s27 = sshll.u32 %s3698_s26, 4  ;;  %s3849_s28 = sadd.s32 4294967295, %s3696_s5   ;;  %s3854_s27 = int_to_ptr.vmem [resolvable:$true] %s622_s27 }
  0x1b   : > { %p2707_p0 = scmp.ge.s32.totalorder %s3696_s5, 1  ;;  %p596_p1 = scmp.lt.s32.totalorder %s3696_s5, 3 }
  0x1c   : > { %p4355_p2 = scmp.eq.s32.totalorder %s3849_s28, 0  ;;  %s3699_s2 = smov [#allocation7]  }
  0x1d   : > { %p3856_p3 = pnand %p2707_p0, %p596_p1  ;;  %s644_s29 = sshll.u32 %s3699_s2, 4  ;;  %s3862_s29 = int_to_ptr.vmem [resolvable:$true] %s644_s29 }
  0x1e   : > { %s3700_s0 = smov [#allocation10]   ;;  %s3701_s3 = smov [#allocation13]  }
  0x1f   : > { %s4383_s6 = scalar_select %p3856_p3, 1, 0 }
  0x20   : > { %p3100_p4 = pneg %p3856_p3  ;;  %s676_s7 = sshll.u32 %s3700_s0, 4  ;;  %s3870_s7 = int_to_ptr.vmem [resolvable:$true] %s676_s7 }
  0x21   : > { %s3872_s25 = sshll.u32 %s3701_s3, 4  ;;  %s4385_s1 = sld [smem:[#allocation28_spill]]  ;;  %s705_s25 = int_to_ptr.vmem [resolvable:$true] %s3872_s25 }
  0x22   : > { %p3866_p5 = pnand %p4355_p2, %p3100_p4 }
  0x24   : > { %p3882_p7 = pneg %p3866_p5 }
  0x27   : > { %s3358_s26 = scalar_lea.hbm %s4385_s1, 32 }
  0x28   : > { %p3359_p6 = scmp.ne.s32.totalorder %s4385_s1, %s3358_s26  ;;  %p3365_p10 = scmp.lt.u32.totalorder %s3358_s26, %s4385_s1 }
  0x2a   : > { %p3361_p8 = pnand %p3882_p7, %p3359_p6 }
  0x2c   : > { %p3362_p9 = pneg %p3361_p8 }
  0x2e   : > { %p3367_p11 = pnand %p3365_p10, %p3362_p9 }
  0x30   : > { %3370 = shalt.err (!%p3367_p11)
}
  0x31   : > { %s3371_s5 = scalar_lea.vmem %s3854_s27, 32  ;;  %p3379_p1 = scmp.lt.s32.totalorder %s3854_s27, %s3854_s27 }
  0x32   : > { %p3372_p12 = scmp.ne.s32.totalorder %s3854_s27, %s3371_s5  ;;  %p3380_p4 = scmp.lt.s32.totalorder %s3371_s5, %s3371_s5 }
  0x34   : > { %p3374_p13 = pnand %p3372_p12, %p3882_p7  ;;  %p3381_p6 = por %p3380_p4, %p3379_p1 }
  0x36   : > { %p3375_p0 = pneg %p3374_p13 }
  0x38   : > { %p3382_p8 = pnand %p3381_p6, %p3375_p0 }
  0x3a   : > { %3385 = shalt.err (!%p3382_p8)
}
  0x3b   : > { %3106 = dma.hbm_to_vmem [thread:$0]  (!%p3866_p5), %s4385_s1, 32, %s3854_s27, [#allocation5]  }
  0x3c   : > { %s4387_s2 = sld [smem:[#allocation30_spill]] }
  0x42   : > { %s3386_s3 = scalar_lea.hbm %s4387_s2, 32 }
  0x43   : > { %p3387_p9 = scmp.ne.s32.totalorder %s4387_s2, %s3386_s3  ;;  %p3393_p12 = scmp.lt.u32.totalorder %s3386_s3, %s4387_s2 }
  0x45   : > { %p3389_p10 = pnand %p3387_p9, %p3882_p7 }
  0x47   : > { %p3390_p11 = pneg %p3389_p10 }
  0x49   : > { %p3395_p13 = pnand %p3393_p12, %p3390_p11 }
  0x4b   : > { %3398 = shalt.err (!%p3395_p13)
}
  0x4c   : > { %s3399_s27 = scalar_lea.vmem %s3862_s29, 32  ;;  %p3407_p6 = scmp.lt.s32.totalorder %s3862_s29, %s3862_s29 }
  0x4d   : > { %p3400_p0 = scmp.ne.s32.totalorder %s3862_s29, %s3399_s27  ;;  %p3408_p8 = scmp.lt.s32.totalorder %s3399_s27, %s3399_s27 }
  0x4f   : > { %p3402_p1 = pnand %p3400_p0, %p3882_p7  ;;  %p3409_p9 = por %p3408_p8, %p3407_p6 }
  0x51   : > { %p3403_p4 = pneg %p3402_p1 }
  0x53   : > { %p3410_p10 = pnand %p3409_p9, %p3403_p4 }
  0x55   : > { %3413 = shalt.err (!%p3410_p10)
}
  0x56   : > { %3112 = dma.hbm_to_vmem [thread:$0]  (!%p3866_p5), %s4387_s2, 32, %s3862_s29, [#allocation8]  }
  0x57   : > { %s4388_s9 = sld [smem:[#allocation35_spill]] }
  0x5d   : > { %s3414_s8 = scalar_lea.hbm %s4388_s9, 3072 }
  0x5e   : > { %p3415_p11 = scmp.ne.s32.totalorder %s4388_s9, %s3414_s8  ;;  %p3421_p0 = scmp.lt.u32.totalorder %s3414_s8, %s4388_s9 }
  0x60   : > { %p3417_p12 = pnand %p3415_p11, %p3882_p7 }
  0x62   : > { %p3418_p13 = pneg %p3417_p12 }
  0x64   : > { %p3423_p1 = pnand %p3421_p0, %p3418_p13 }
  0x66   : > { %3426 = shalt.err (!%p3423_p1)
}
  0x67   : > { %s3427_s29 = scalar_lea.vmem %s3870_s7, 3072  ;;  %p3435_p9 = scmp.lt.s32.totalorder %s3870_s7, %s3870_s7 }
  0x68   : > { %p3428_p4 = scmp.ne.s32.totalorder %s3870_s7, %s3427_s29  ;;  %p3436_p10 = scmp.lt.s32.totalorder %s3427_s29, %s3427_s29 }
  0x6a   : > { %p3430_p6 = pnand %p3428_p4, %p3882_p7  ;;  %p3437_p11 = por %p3436_p10, %p3435_p9 }
  0x6c   : > { %p3431_p8 = pneg %p3430_p6 }
  0x6e   : > { %p3438_p12 = pnand %p3437_p11, %p3431_p8 }
  0x70   : > { %3441 = shalt.err (!%p3438_p12)
}
  0x71   : > { %s4357_s27 = smov 64   ;;  %s4359_s18 = smov 4  }
  0x72   : > { %3118 = dma.hbm_to_vmem [thread:$0]  (!%p3866_p5), %s4388_s9, 3072, %s3870_s7, [#allocation11], %s4357_s27, %s4357_s27, %s4359_s18  }
  0x73   : > { %s4389_s12 = sld [smem:[#allocation36_spill]] }
  0x79   : > { %s3442_s4 = scalar_lea.hbm %s4389_s12, 16 }
  0x7a   : > { %p3443_p13 = scmp.ne.s32.totalorder %s4389_s12, %s3442_s4  ;;  %p3449_p4 = scmp.lt.u32.totalorder %s3442_s4, %s4389_s12 }
  0x7c   : > { %p3445_p0 = pnand %p3443_p13, %p3882_p7 }
  0x7e   : > { %p3446_p1 = pneg %p3445_p0 }
  0x80   : > { %p3451_p6 = pnand %p3449_p4, %p3446_p1 }
  0x82   : > { %3454 = shalt.err (!%p3451_p6)
}
  0x83   : > { %s3455_s20 = scalar_lea.vmem %s705_s25, 16  ;;  %s3462_s7 = scalar_lea.vmem %s705_s25, 32 }
  0x84   : > { %p3456_p8 = scmp.ne.s32.totalorder %s705_s25, %s3455_s20  ;;  %p3463_p11 = scmp.lt.s32.totalorder %s705_s25, %s705_s25 }
  0x85   : > { %p3464_p12 = scmp.lt.s32.totalorder %s3462_s7, %s3455_s20 }
  0x86   : > { %p3458_p9 = pnand %p3456_p8, %p3882_p7 }
  0x87   : > { %p3465_p2 = por %p3464_p12, %p3463_p11 }
  0x88   : > { %p3459_p10 = pneg %p3458_p9 }
  0x8a   : > { %p3466_p3 = pnand %p3465_p2, %p3459_p10 }
  0x8c   : > { %3469 = shalt.err (!%p3466_p3)
}
  0x8d   : > { %3124 = dma.hbm_to_vmem [thread:$0]  (!%p3866_p5), %s4389_s12, 16, %s705_s25, [#allocation14]  }
  0x8e   : > { %s3704_s8 = smov [#allocation16]   ;;  %s3705_s26 = smov [#allocation2]  }
  0x8f   : > { %s736_s4 = sshll.u32 %s3704_s8, 4  ;;  %s608_s3 = sshll.u32 %s3705_s26, 4  ;;  %s737_s4 = int_to_ptr.vmem [resolvable:$true] %s736_s4  ;;  %s609_s3 = int_to_ptr.vmem [resolvable:$true] %s608_s3 }
  0x90   : > { %s4390_s17 = sld [smem:[#allocation38_spill]] }
  0x96   : > { %s3470_s27 = scalar_lea.hbm %s4390_s17, 1024 }
  0x97   : > { %p3471_p2 = scmp.ne.s32.totalorder %s4390_s17, %s3470_s27  ;;  %p3477_p0 = scmp.lt.u32.totalorder %s3470_s27, %s4390_s17 }
  0x99   : > { %p3473_p3 = pnand %p3471_p2, %p3882_p7 }
  0x9b   : > { %p3474_p13 = pneg %p3473_p3 }
  0x9d   : > { %p3479_p1 = pnand %p3477_p0, %p3474_p13 }
  0x9f   : > { %3482 = shalt.err (!%p3479_p1)
}
  0xa0   : > { %s3483_s25 = scalar_lea.vmem %s737_s4, 1024  ;;  %p3491_p9 = scmp.lt.s32.totalorder %s737_s4, %s737_s4 }
  0xa1   : > { %p3484_p4 = scmp.ne.s32.totalorder %s737_s4, %s3483_s25  ;;  %p3492_p10 = scmp.lt.s32.totalorder %s3483_s25, %s3483_s25 }
  0xa3   : > { %p3486_p6 = pnand %p3484_p4, %p3882_p7  ;;  %p3493_p11 = por %p3492_p10, %p3491_p9 }
  0xa5   : > { %p3487_p8 = pneg %p3486_p6 }
  0xa7   : > { %p3494_p12 = pnand %p3493_p11, %p3487_p8 }
  0xa9   : > { %3497 = shalt.err (!%p3494_p12)
}
  0xaa   : > { %s4391_s23 = smov 4   ;;  %s4392_s8 = smov 64  }
  0xab   : > { %3130 = dma.hbm_to_vmem [thread:$0]  (!%p3866_p5), %s4390_s17, 1024, %s737_s4, [#allocation17], %s4392_s8, %s4392_s8, %s4391_s23  }
  0xac   : > { %s4393_s29 = sld [smem:[#allocation27_spill]] }
  0xb2   : > { %s3498_s20 = scalar_lea.hbm %s4393_s29, 2048 }
  0xb3   : > { %p3499_p2 = scmp.ne.s32.totalorder %s4393_s29, %s3498_s20  ;;  %p3505_p0 = scmp.lt.u32.totalorder %s3498_s20, %s4393_s29 }
  0xb5   : > { %p3501_p3 = pnand %p3499_p2, %p3882_p7 }
  0xb7   : > { %p3502_p13 = pneg %p3501_p3 }
  0xb9   : > { %p3507_p1 = pnand %p3505_p0, %p3502_p13 }
  0xbb   : > { %3510 = shalt.err (!%p3507_p1)
}
  0xbc   : > { %s3511_s18 = scalar_lea.vmem %s609_s3, 2048  ;;  %p3519_p9 = scmp.lt.s32.totalorder %s609_s3, %s609_s3 }
  0xbd   : > { %p3512_p4 = scmp.ne.s32.totalorder %s609_s3, %s3511_s18  ;;  %p3520_p10 = scmp.lt.s32.totalorder %s3511_s18, %s3511_s18 }
  0xbf   : > { %p3514_p6 = pnand %p3512_p4, %p3882_p7  ;;  %p3521_p11 = por %p3520_p10, %p3519_p9 }
  0xc1   : > { %p3515_p8 = pneg %p3514_p6 }
  0xc3   : > { %p3522_p12 = pnand %p3521_p11, %p3515_p8 }
  0xc5   : > { %3525 = shalt.err (!%p3522_p12)
}
  0xc6   : > { %s3706_s4 = smov 128   ;;  %s3707_s27 = smov 8  }
  0xc7   : > { %3103 = dma.hbm_to_vmem [thread:$0]  (!%p3866_p5), %s4393_s29, 2048, %s609_s3, [#allocation3], %s3706_s4, %s3706_s4, %s3707_s27  }
  0xc8   : > { %s3708_s5 = smov [#allocation6]   ;;  %s3709_s7 = smov [#allocation9]  }
  0xc9   : > { %s633_s20 = sshll.u32 %s3708_s5, 4  ;;  %s654_s21 = sshll.u32 %s3709_s7, 4  ;;  %s634_s20 = int_to_ptr.vmem [resolvable:$true] %s633_s20  ;;  %s655_s21 = int_to_ptr.vmem [resolvable:$true] %s654_s21 }
  0xca   : > { %s4394_s18 = sld [smem:[#allocation29_spill]] }
  0xd0   : > { %s3526_s9 = scalar_lea.hbm %s4394_s18, 32 }
  0xd1   : > { %p3527_p2 = scmp.ne.s32.totalorder %s4394_s18, %s3526_s9  ;;  %p3533_p0 = scmp.lt.u32.totalorder %s3526_s9, %s4394_s18 }
  0xd3   : > { %p3529_p3 = pnand %p3527_p2, %p3882_p7 }
  0xd5   : > { %p3530_p13 = pneg %p3529_p3 }
  0xd7   : > { %p3535_p1 = pnand %p3533_p0, %p3530_p13 }
  0xd9   : > { %3538 = shalt.err (!%p3535_p1)
}
  0xda   : > { %s3539_s3 = scalar_lea.vmem %s634_s20, 32  ;;  %p3547_p9 = scmp.lt.s32.totalorder %s634_s20, %s634_s20 }
  0xdb   : > { %p3540_p4 = scmp.ne.s32.totalorder %s634_s20, %s3539_s3  ;;  %p3548_p10 = scmp.lt.s32.totalorder %s3539_s3, %s3539_s3 }
  0xdd   : > { %p3542_p6 = pnand %p3540_p4, %p3882_p7  ;;  %p3549_p11 = por %p3548_p10, %p3547_p9 }
  0xdf   : > { %p3543_p8 = pneg %p3542_p6 }
  0xe1   : > { %p3550_p12 = pnand %p3549_p11, %p3543_p8 }
  0xe3   : > { %3553 = shalt.err (!%p3550_p12)
}
  0xe4   : > { %3109 = dma.hbm_to_vmem [thread:$0]  (!%p3866_p5), %s4394_s18, 32, %s634_s20, [#allocation5]  }
  0xe5   : > { %s4395_s22 = sld [smem:[#allocation31_spill]] }
  0xeb   : > { %s3554_s2 = scalar_lea.hbm %s4395_s22, 6144 }
  0xec   : > { %p3555_p2 = scmp.ne.s32.totalorder %s4395_s22, %s3554_s2  ;;  %p3561_p0 = scmp.lt.u32.totalorder %s3554_s2, %s4395_s22 }
  0xee   : > { %p3557_p3 = pnand %p3555_p2, %p3882_p7 }
  0xf0   : > { %p3558_p13 = pneg %p3557_p3 }
  0xf2   : > { %p3563_p1 = pnand %p3561_p0, %p3558_p13 }
  0xf4   : > { %3566 = shalt.err (!%p3563_p1)
}
  0xf5   : > { %s3567_s5 = scalar_lea.vmem %s655_s21, 6144  ;;  %p3575_p9 = scmp.lt.s32.totalorder %s655_s21, %s655_s21 }
  0xf6   : > { %p3568_p4 = scmp.ne.s32.totalorder %s655_s21, %s3567_s5  ;;  %p3576_p10 = scmp.lt.s32.totalorder %s3567_s5, %s3567_s5 }
  0xf8   : > { %p3570_p6 = pnand %p3568_p4, %p3882_p7  ;;  %p3577_p11 = por %p3576_p10, %p3575_p9 }
  0xfa   : > { %p3571_p8 = pneg %p3570_p6 }
  0xfc   : > { %p3578_p12 = pnand %p3577_p11, %p3571_p8 }
  0xfe   : > { %3581 = shalt.err (!%p3578_p12)
}
  0xff   : > { %s3710_s20 = smov 192   ;;  %s3711_s7 = smov 12  }
 0x100   : > { %3115 = dma.hbm_to_vmem [thread:$0]  (!%p3866_p5), %s4395_s22, 6144, %s655_s21, [#allocation8], %s3710_s20, %s3710_s20, %s3711_s7  }
 0x101   : > { %s3712_s12 = smov [#allocation12]   ;;  %s3713_s9 = smov [#allocation15]  }
 0x102   : > { %s693_s17 = sshll.u32 %s3712_s12, 4  ;;  %s720_s16 = sshll.u32 %s3713_s9, 4  ;;  %s694_s17 = int_to_ptr.vmem [resolvable:$true] %s693_s17  ;;  %s721_s16 = int_to_ptr.vmem [resolvable:$true] %s720_s16 }
 0x103   : > { %s3582_s27 = scalar_lea.hbm %s4335_s11, 16 }
 0x104   : > { %p3583_p2 = scmp.ne.s32.totalorder %s4335_s11, %s3582_s27  ;;  %p3589_p0 = scmp.lt.u32.totalorder %s3582_s27, %s4335_s11 }
 0x106   : > { %p3585_p3 = pnand %p3583_p2, %p3882_p7 }
 0x108   : > { %p3586_p13 = pneg %p3585_p3 }
 0x10a   : > { %p3591_p1 = pnand %p3589_p0, %p3586_p13 }
 0x10c   : > { %3594 = shalt.err (!%p3591_p1)
}
 0x10d   : > { %s3595_s21 = scalar_lea.vmem %s694_s17, 16  ;;  %s3602_s20 = scalar_lea.vmem %s694_s17, 32 }
 0x10e   : > { %p3596_p4 = scmp.ne.s32.totalorder %s694_s17, %s3595_s21  ;;  %p3603_p9 = scmp.lt.s32.totalorder %s694_s17, %s694_s17 }
 0x10f   : > { %p3604_p10 = scmp.lt.s32.totalorder %s3602_s20, %s3595_s21 }
 0x110   : > { %p3598_p6 = pnand %p3596_p4, %p3882_p7 }
 0x111   : > { %p3605_p11 = por %p3604_p10, %p3603_p9 }
 0x112   : > { %p3599_p8 = pneg %p3598_p6 }
 0x114   : > { %p3606_p12 = pnand %p3605_p11, %p3599_p8 }
 0x116   : > { %3609 = shalt.err (!%p3606_p12)
}
 0x117   : > { %3121 = dma.hbm_to_vmem [thread:$0]  (!%p3866_p5), %s4335_s11, 16, %s694_s17, [#allocation11]  }
 0x118   : > { %s3610_s12 = scalar_lea.hbm %s4339_s15, 1024 }
 0x119   : > { %p3611_p2 = scmp.ne.s32.totalorder %s4339_s15, %s3610_s12  ;;  %p3617_p0 = scmp.lt.u32.totalorder %s3610_s12, %s4339_s15 }
 0x11b   : > { %p3613_p3 = pnand %p3611_p2, %p3882_p7 }
 0x11d   : > { %p3614_p13 = pneg %p3613_p3 }
 0x11f   : > { %p3619_p1 = pnand %p3617_p0, %p3614_p13 }
 0x121   : > { %3622 = shalt.err (!%p3619_p1)
}
 0x122   : > { %s3623_s1 = scalar_lea.vmem %s721_s16, 1024  ;;  %p3631_p9 = scmp.lt.s32.totalorder %s721_s16, %s721_s16 }
 0x123   : > { %p3624_p4 = scmp.ne.s32.totalorder %s721_s16, %s3623_s1  ;;  %p3632_p10 = scmp.lt.s32.totalorder %s3623_s1, %s3623_s1 }
 0x125   : > { %p3626_p6 = pnand %p3624_p4, %p3882_p7  ;;  %p3633_p11 = por %p3632_p10, %p3631_p9 }
 0x127   : > { %p3627_p8 = pneg %p3626_p6 }
 0x129   : > { %p3634_p12 = pnand %p3633_p11, %p3627_p8 }
 0x12b   : > { %3637 = shalt.err (!%p3634_p12)
}
 0x12c   : > { %3127 = dma.hbm_to_vmem [thread:$0]  (!%p3866_p5), %s4339_s15, 1024, %s721_s16, [#allocation14], %s4392_s8, %s4392_s8, %s4391_s23  }
 0x12d   : > { %s3714_s5 = smov [#allocation18]   ;;  %s3638_s25 = scalar_lea.hbm %s4343_s19, 1024 }
 0x12e   : > { %s752_s21 = sshll.u32 %s3714_s5, 4  ;;  %p3639_p2 = scmp.ne.s32.totalorder %s4343_s19, %s3638_s25  ;;  %s753_s21 = int_to_ptr.vmem [resolvable:$true] %s752_s21 }
 0x12f   : > { %p3645_p0 = scmp.lt.u32.totalorder %s3638_s25, %s4343_s19 }
 0x130   : > { %p3641_p3 = pnand %p3639_p2, %p3882_p7 }
 0x132   : > { %p3642_p13 = pneg %p3641_p3 }
 0x134   : > { %p3647_p1 = pnand %p3645_p0, %p3642_p13 }
 0x136   : > { %3650 = shalt.err (!%p3647_p1)
}
 0x137   : > { %s3651_s16 = scalar_lea.vmem %s753_s21, 1024  ;;  %p3659_p9 = scmp.lt.s32.totalorder %s753_s21, %s753_s21 }
 0x138   : > { %p3652_p4 = scmp.ne.s32.totalorder %s753_s21, %s3651_s16  ;;  %p3660_p10 = scmp.lt.s32.totalorder %s3651_s16, %s3651_s16 }
 0x13a   : > { %p3654_p6 = pnand %p3652_p4, %p3882_p7  ;;  %p3661_p11 = por %p3660_p10, %p3659_p9 }
 0x13c   : > { %p3655_p8 = pneg %p3654_p6 }
 0x13e   : > { %p3662_p12 = pnand %p3661_p11, %p3655_p8 }
 0x140   : > { %3665 = shalt.err (!%p3662_p12)
}
 0x141   : > { %3133 = dma.hbm_to_vmem [thread:$0]  (!%p3866_p5), %s4343_s19, 1024, %s753_s21, [#allocation17], %s4392_s8, %s4392_s8, %s4391_s23  }
 0x142   : > { %p4396_p2 = scmp.ne.s32.totalorder %s4383_s6, 0 }
 0x143   : > { %p4397_p7 = scmp.eq.s32.totalorder (!%p4396_p2), %s3849_s28, 0 }
 0x144   : > { %778 = sbr.rel (%p4396_p2) target bundleno = 2889 (0xb49), region = 104 }
 0x14b   : > { %3671 = dma.done.wait (%p4397_p7), [#allocation3], 2048   ;;  %p4398_p3 = pmov %p4397_p7 }
 0x14d   : > { %3673 = vsyncadd (%p4398_p3), [#allocation3], 4294965248  ;;  %p4399_p13 = pmov %p4398_p3 }
 0x14e   : > { %p4400_p0 = pmov %p4398_p3 }
 0x14f   : > { %3675 = dma.done.wait (%p4399_p13), [#allocation5], 64  }
 0x150   : > { %3677 = vsyncadd (%p4400_p0), [#allocation5], 4294967232  ;;  %p4401_p1 = pmov %p4400_p0 }
 0x151   : > { %p4402_p5 = pmov %p4400_p0 }
 0x152   : > { %3679 = dma.done.wait (%p4401_p1), [#allocation8], 6176  }
 0x153   : > { %3681 = vsyncadd (%p4402_p5), [#allocation8], 4294961120  ;;  %p4403_p4 = pmov %p4400_p0 }
 0x154   : > { %p4404_p6 = pmov %p4400_p0 }
 0x155   : > { %3683 = dma.done.wait (%p4403_p4), [#allocation11], 3088  }
 0x156   : > { %3685 = vsyncadd (%p4404_p6), [#allocation11], 4294964208  ;;  %p4405_p8 = pmov %p4400_p0 }
 0x157   : > { %p4406_p9 = pmov %p4400_p0 }
 0x158   : > { %3687 = dma.done.wait (%p4405_p8), [#allocation14], 1040  }
 0x159   : > { %3689 = vsyncadd (%p4406_p9), [#allocation14], 4294966256  ;;  %p4407_p10 = pmov %p4400_p0 }
 0x15a   : > { %p4408_p11 = pmov %p4400_p0 }
 0x15b   : > { %3691 = dma.done.wait (%p4407_p10), [#allocation17], 2048  }
 0x15c   : > { %3693 = vsyncadd (%p4408_p11), [#allocation17], 4294965248  ;;  %v3715_v0 = vmov 0   ;;  %v3184_v1 = vld [vmem:[#allocation2 + $0x4] ss:$8 sps:$4 sm:$0xff]   ;;  %p894_p12 = scmp.lt.s32.totalorder %s3849_s28, 1  ;;  %v934_v38 = vlaneseq }
 0x15d   : > { %1056 = vmatprep.mubr.bf16.mxu0 %v3715_v0  ;;  %v3186_v2 = vld [vmem:[#allocation2] ss:$8 sps:$4 sm:$0xff]   ;;  %1024 = vmatprep.subr.bf16.mxu0 %v3184_v1  ;;  %v3187_v3 = vld [vmem:[#allocation2 + $0x14] ss:$8 sps:$4 sm:$0xff]   ;;  %v3189_v4 = vld [vmem:[#allocation2 + $0x10] ss:$8 sps:$4 sm:$0xff]  }
 0x15e   : > { %1025 = vmatpush1.bf16.msra.mxu0 %v3186_v2  ;;  %v3190_v5 = vld [vmem:[#allocation2 + $0x24] ss:$8 sps:$4 sm:$0xff]   ;;  %v3192_v6 = vld [vmem:[#allocation2 + $0x20] ss:$8 sps:$4 sm:$0xff]   ;;  %v3193_v7 = vld [vmem:[#allocation2 + $0x34] ss:$8 sps:$4 sm:$0xff]  }
 0x15f   : > { %1026 = vmatprep.subr.bf16.mxu0 %v3187_v3  ;;  %v3195_v8 = vld [vmem:[#allocation2 + $0x30] ss:$8 sps:$4 sm:$0xff]   ;;  %v3196_v9 = vld [vmem:[#allocation2 + $0x44] ss:$8 sps:$4 sm:$0xff]   ;;  %v3198_v10 = vld [vmem:[#allocation2 + $0x40] ss:$8 sps:$4 sm:$0xff]  }
 0x160   : > { %v3199_v11 = vld [vmem:[#allocation2 + $0x54] ss:$8 sps:$4 sm:$0xff]   ;;  %v3201_v12 = vld [vmem:[#allocation2 + $0x50] ss:$8 sps:$4 sm:$0xff]   ;;  %v3202_v13 = vld [vmem:[#allocation2 + $0x64] ss:$8 sps:$4 sm:$0xff]  }
 0x161   : > { %s4421_s28 = smov (!%p894_p12, %s3849_s28), 1  ;;  %v3204_v14 = vld [vmem:[#allocation2 + $0x60] ss:$8 sps:$4 sm:$0xff]   ;;  %v3205_v15 = vld [vmem:[#allocation2 + $0x74] ss:$8 sps:$4 sm:$0xff]   ;;  %s4409_s23 = sld [smem:[#allocation26_spill]] }
 0x162   : > { %1027 = vmatpush1.bf16.msra.mxu0 %v3189_v4  ;;  %s2732_s6 = sshll.u32 %s4421_s28, 2  ;;  %v3207_v16 = vld [vmem:[#allocation2 + $0x70] ss:$8 sps:$4 sm:$0xff]   ;;  %v3213_v21 = vld [vmem:[#allocation9 + $0x18] ss:$12 sps:$4 sm:$0xff]   ;;  %v4141_v39 = vshrl.u32 %v934_v38, 7 }
 0x163   : > { %1028 = vmatprep.subr.bf16.mxu0 %v3190_v5  ;;  %v3208_v18 = vld [vmem:[#allocation9 + $0x4] ss:$12 sps:$4 sm:$0xff]   ;;  %v3210_v19 = vld [vmem:[#allocation9] ss:$12 sps:$4 sm:$0xff]   ;;  %v3211_v20 = vld [vmem:[#allocation9 + $0x1c] ss:$12 sps:$4 sm:$0xff]  }
 0x164   : > { %1468 = vmatprep.subr.bf16.mxu1 %v3208_v18  ;;  %v3214_v22 = vld [vmem:[#allocation9 + $0x34] ss:$12 sps:$4 sm:$0xff]   ;;  %v3216_v25 = vld [vmem:[#allocation9 + $0x30] ss:$12 sps:$4 sm:$0xff]   ;;  %v3217_v26 = vld [vmem:[#allocation9 + $0x4c] ss:$12 sps:$4 sm:$0xff]  }
 0x165   : > { %1469 = vmatpush1.bf16.msra.mxu1 %v3210_v19  ;;  %v3234_v23 = vld [vmem:[#allocation9 + $0xc8] ss:$12 sps:$4 sm:$0xff]   ;;  %v3220_v28 = vld [vmem:[#allocation9 + $0x64] ss:$12 sps:$4 sm:$0xff]   ;;  %v3222_v29 = vld [vmem:[#allocation9 + $0x60] ss:$12 sps:$4 sm:$0xff]  }
 0x166   : > { %1029 = vmatpush1.bf16.msra.mxu0 %v3192_v6  ;;  %1470 = vmatprep.subr.bf16.mxu1 %v3211_v20  ;;  %v3236_v24 = vld [vmem:[#allocation9 + $0x8] ss:$12 sps:$4 sm:$0xff]   ;;  %v3225_v31 = vld [vmem:[#allocation9 + $0x78] ss:$12 sps:$4 sm:$0xff]   ;;  %v3228_v33 = vld [vmem:[#allocation9 + $0x90] ss:$12 sps:$4 sm:$0xff]  }
 0x167   : > { %1030 = vmatprep.subr.bf16.mxu0 %v3193_v7  ;;  %s897_s8 = scalar_lea.vmem %s4409_s23, %s2732_s6  ;;  %v3219_v27 = vld [vmem:[#allocation9 + $0x48] ss:$12 sps:$4 sm:$0xff]   ;;  %v3229_v34 = vld [vmem:[#allocation9 + $0xac] ss:$12 sps:$4 sm:$0xff]   ;;  %v3232_v36 = vld [vmem:[#allocation9 + $0xc4] ss:$12 sps:$4 sm:$0xff]  }
 0x168   : > { %v915_v17 = vld [vmem:[%s897_s8] sm:$0xf]  ;;  %v3226_v32 = vld [vmem:[#allocation9 + $0x94] ss:$12 sps:$4 sm:$0xff]   ;;  %v4144_v40 = vsub.s32 0, %v4141_v39  ;;  %v4147_v42 = vsub.s32 1, %v4141_v39 }
 0x169   : > { %1471 = vmatpush1.bf16.msra.mxu1 %v3213_v21  ;;  %v3223_v30 = vld [vmem:[#allocation9 + $0x7c] ss:$12 sps:$4 sm:$0xff]   ;;  %v3235_v37 = vld [vmem:[#allocation9 + $0xc0] ss:$12 sps:$4 sm:$0xff]   ;;  %v932_v41 = vld [vmem:[#allocation4] sm:$0x3] }
 0x16a   : > { %1031 = vmatpush1.bf16.msra.mxu0 %v3195_v8  ;;  %1472 = vmatprep.subr.bf16.mxu1 %v3214_v22  ;;  %v3231_v35 = vld [vmem:[#allocation9 + $0xa8] ss:$12 sps:$4 sm:$0xff]   ;;  %v937_v43 = vrot.slane %v932_v41, %v4144_v40  ;;  %v941_v44 = vrot.slane %v932_v41, %v4147_v42  ;;  %v3249_v18 = vld [vmem:[#allocation9 + $0x110] ss:$12 sps:$4 sm:$0xff]   ;;  %s4410_s17 = sld [smem:[#allocation32_spill]]  ;;  %vm3717_vm0 = vmmov 0  }
 0x16b   : > { %1032 = vmatprep.subr.bf16.mxu0 %v3196_v9  ;;  %v3237_v9 = vld [vmem:[#allocation9 + $0xdc] ss:$12 sps:$4 sm:$0xff]   ;;  %v3252_v21 = vld [vmem:[#allocation9 + $0x124] ss:$12 sps:$4 sm:$0xff]   ;;  %s4411_s21 = sld [smem:[#allocation33_spill]]  ;;  %s4412_s25 = sld [smem:[#allocation34_spill]] }
 0x16c   : > { %v3250_v19 = vld [vmem:[#allocation9 + $0x108] ss:$12 sps:$4 sm:$0xff]   ;;  %v3251_v20 = vld [vmem:[#allocation9 + $0x50] ss:$12 sps:$4 sm:$0xff]   ;;  %s4258_s20 = sshll.u32 %s4421_s28, 3  ;;  %s4413_s16 = sld [smem:[#allocation37_spill]] }
 0x16d   : > { %1473 = vmatpush1.bf16.msra.mxu1 %v3216_v25  ;;  %v3254_v22 = vld [vmem:[#allocation9 + $0x128] ss:$12 sps:$4 sm:$0xff]   ;;  %s913_s18 = scalar_lea.vmem %s4348_s24, %s4258_s20  ;;  %s4414_s6 = sld [smem:[#allocation42_spill]] }
 0x16e   : > { %1033 = vmatpush1.bf16.msra.mxu0 %v3198_v10  ;;  %1474 = vmatprep.subr.bf16.mxu1 %v3217_v26  ;;  %v3239_v10 = vld [vmem:[#allocation9 + $0xe0] ss:$12 sps:$4 sm:$0xff]   ;;  %v3257_v25 = vld [vmem:[#allocation9 + $0x13c] ss:$12 sps:$4 sm:$0xff]   ;;  %s4415_s8 = sld [smem:[#allocation41_spill]]  ;;  %s4416_s26 = sld [smem:[#allocation39_spill]] }
 0x16f   : > { %1034 = vmatprep.subr.bf16.mxu0 %v3199_v11  ;;  %v3240_v11 = vld [vmem:[#allocation9 + $0xd8] ss:$12 sps:$4 sm:$0xff]   ;;  %v3259_v26 = vld [vmem:[#allocation9 + $0x140] ss:$12 sps:$4 sm:$0xff]   ;;  %s4417_s7 = sld [smem:[#allocation40_spill]]  ;;  %s4418_s28 = sld [smem:[#allocation43_spill]] }
 0x171   : > { %1475 = vmatpush1.bf16.msra.mxu1 %v3219_v27  ;;  %v3260_v27 = vld [vmem:[#allocation9 + $0x138] ss:$12 sps:$4 sm:$0xff]  }
 0x172   : > { %1035 = vmatpush1.bf16.msra.mxu0 %v3201_v12  ;;  %1476 = vmatprep.subr.bf16.mxu1 %v3220_v28  ;;  %v3241_v12 = vld [vmem:[#allocation9 + $0x20] ss:$12 sps:$4 sm:$0xff]  }
 0x173   : > { %1036 = vmatprep.subr.bf16.mxu0 %v3202_v13  ;;  %v3242_v13 = vld [vmem:[#allocation9 + $0xf4] ss:$12 sps:$4 sm:$0xff]   ;;  %s905_s30 = scalar_lea.vmem %s4414_s6, %s4258_s20 }
 0x174   : > { %v3261_v28 = vld [vmem:[#allocation9 + $0x80] ss:$12 sps:$4 sm:$0xff]   ;;  %s901_s27 = scalar_lea.vmem %s4415_s8, %s4258_s20 }
 0x175   : > { %1477 = vmatpush1.bf16.msra.mxu1 %v3222_v29  ;;  %v3262_v29 = vld [vmem:[#allocation9 + $0x154] ss:$12 sps:$4 sm:$0xff]   ;;  %s909_s3 = scalar_lea.vmem %s4418_s28, %s4258_s20 }
 0x176   : > { %1037 = vmatpush1.bf16.msra.mxu0 %v3204_v14  ;;  %1478 = vmatprep.subr.bf16.mxu1 %v3223_v30  ;;  %v3244_v14 = vld [vmem:[#allocation9 + $0xf8] ss:$12 sps:$4 sm:$0xff]  }
 0x177   : > { %1038 = vmatprep.subr.bf16.mxu0 %v3205_v15  ;;  %v3245_v15 = vld [vmem:[#allocation9 + $0xf0] ss:$12 sps:$4 sm:$0xff]   ;;  %v3264_v30 = vld [vmem:[#allocation9 + $0x158] ss:$12 sps:$4 sm:$0xff]  }
 0x179   : > { %1479 = vmatpush1.bf16.msra.mxu1 %v3225_v31  ;;  %v3265_v31 = vld [vmem:[#allocation9 + $0x150] ss:$12 sps:$4 sm:$0xff]  }
 0x17a   : > { %1039 = vmatpush1.bf16.msra.mxu0 %v3207_v16  ;;  %1480 = vmatprep.subr.bf16.mxu1 %v3226_v32  ;;  %v3246_v16 = vld [vmem:[#allocation9 + $0x38] ss:$12 sps:$4 sm:$0xff]  }
 0x17b   : > { %2867 = vmatprep.subr.bf16.mxu0 %v3234_v23  ;;  %v3255_v23 = vld [vmem:[#allocation9 + $0x120] ss:$12 sps:$4 sm:$0xff]   ;;  %v3266_v32 = vld [vmem:[#allocation9 + $0x98] ss:$12 sps:$4 sm:$0xff]  }
 0x17d   : > { %1057 = vmatmul.mubr.bf16.vlgmr.msra.gmra.mrb[0].mxu0 %v915_v17  ;;  %1481 = vmatpush1.bf16.msra.mxu1 %v3228_v33  ;;  %v3247_v17 = vld [vmem:[#allocation9 + $0x10c] ss:$12 sps:$4 sm:$0xff]  }
 0x17e   : > { %2868 = vmatpush3.bf16.msra.mxu0 %v3236_v24  ;;  %1482 = vmatprep.subr.bf16.mxu1 %v3229_v34  ;;  %v3256_v24 = vld [vmem:[#allocation9 + $0x68] ss:$12 sps:$4 sm:$0xff]   ;;  %v3267_v33 = vld [vmem:[#allocation9 + $0x16c] ss:$12 sps:$4 sm:$0xff]   ;;  %v3269_v34 = vld [vmem:[#allocation9 + $0x170] ss:$12 sps:$4 sm:$0xff]  }
 0x17f   : > { %2869 = vmatprep.subr.bf16.mxu0 %v3239_v10 }
 0x181   : > { %1483 = vmatpush1.bf16.msra.mxu1 %v3231_v35  ;;  %v3270_v35 = vld [vmem:[#allocation9 + $0x168] ss:$12 sps:$4 sm:$0xff]  }
 0x182   : > { %1484 = vmatprep.subr.bf16.mxu1 %v3232_v36  ;;  %2870 = vmatpush3.bf16.msra.mxu0 %v3241_v12  ;;  %v3271_v36 = vld [vmem:[#allocation9 + $0xb0] ss:$12 sps:$4 sm:$0xff]  }
 0x183   : > { %2871 = vmatprep.subr.bf16.mxu0 %v3244_v14 }
 0x185   : > { %1485 = vmatpush1.bf16.msra.mxu1 %v3235_v37 }
 0x186   : > { %1486 = vmatprep.subr.bf16.mxu1 %v3237_v9  ;;  %2872 = vmatpush3.bf16.msra.mxu0 %v3246_v16 }
 0x187   : > { %2873 = vmatprep.subr.bf16.mxu0 %v3249_v18 }
 0x189   : > { %1487 = vmatpush1.bf16.msra.mxu1 %v3240_v11 }
 0x18a   : > { %1488 = vmatprep.subr.bf16.mxu1 %v3242_v13  ;;  %2874 = vmatpush3.bf16.msra.mxu0 %v3251_v20 }
 0x18b   : > { %2875 = vmatprep.subr.bf16.mxu0 %v3254_v22 }
 0x18d   : > { %1489 = vmatpush1.bf16.msra.mxu1 %v3245_v15 }
 0x18e   : > { %1490 = vmatprep.subr.bf16.mxu1 %v3247_v17  ;;  %2876 = vmatpush3.bf16.msra.mxu0 %v3256_v24 }
 0x18f   : > { %2877 = vmatprep.subr.bf16.mxu0 %v3259_v26 }
 0x191   : > { %1491 = vmatpush1.bf16.msra.mxu1 %v3250_v19 }
 0x192   : > { %1492 = vmatprep.subr.bf16.mxu1 %v3252_v21  ;;  %2878 = vmatpush3.bf16.msra.mxu0 %v3261_v28 }
 0x193   : > { %2879 = vmatprep.subr.bf16.mxu0 %v3264_v30 }
 0x195   : > { %1493 = vmatpush1.bf16.msra.mxu1 %v3255_v23 }
 0x196   : > { %1494 = vmatprep.subr.bf16.mxu1 %v3257_v25  ;;  %2880 = vmatpush3.bf16.msra.mxu0 %v3266_v32 }
 0x197   : > { %2881 = vmatprep.subr.bf16.mxu0 %v3269_v34 }
 0x199   : > { %1495 = vmatpush1.bf16.msra.mxu1 %v3260_v27 }
 0x19a   : > { %1496 = vmatprep.subr.bf16.mxu1 %v3262_v29  ;;  %2882 = vmatpush3.bf16.msra.mxu0 %v3271_v36 }
 0x19d   : > { %1497 = vmatpush1.bf16.msra.mxu1 %v3265_v31 }
 0x19e   : > { %1498 = vmatprep.subr.bf16.mxu1 %v3267_v33 }
 0x1a1   : > { %1499 = vmatpush1.bf16.msra.mxu1 %v3270_v35 }
 0x250   : > { %v1058_v45 = vpop.f32.mrb[0].mxu0 }
 0x251   : > { %v1059_v46 = vadd.f32 %v1058_v45, %v937_v43  ;;  %v1060_v47 = vpop.f32.mrb[1].mxu0 }
 0x252   : > { %v1061_v48 = vadd.f32 %v1060_v47, %v941_v44  ;;  %v1062_v49 = vpop.f32.mrb[2].mxu0 }
 0x253   : > { %v1065_v50 = vmul.f32 %v1059_v46, %v1059_v46  ;;  %v1063_v51 = vpop.f32.mrb[3].mxu0  ;;  %v1084_v49 = vld [vmem:[#allocation7] sm:$0x3] }
 0x254   : > { %v1066_v52 = vmul.f32 %v1061_v48, %v1061_v48 }
 0x255   : > { %v1067_v53 = vmul.f32 %v1065_v50, %v1059_v46 }
 0x256   : > { %v1068_v54 = vmul.f32 %v1066_v52, %v1061_v48 }
 0x257   : > { %v1069_v55 = vmul.f32 0.044715, %v1067_v53 }
 0x258   : > { %v1070_v56 = vmul.f32 0.044715, %v1068_v54 }
 0x259   : > { %v1071_v57 = vadd.f32 %v1069_v55, %v1059_v46 }
 0x25a   : > { %v1072_v58 = vadd.f32 %v1070_v56, %v1061_v48  ;;  %v1120_v56 = vrot.slane %v1084_v49, %v4144_v40 }
 0x25b   : > { %v1073_v59 = vmul.f32 0.7978846, %v1071_v57  ;;  %v1124_v57 = vrot.slane %v1084_v49, %v4147_v42 }
 0x25c   : > { %v1074_v60 = vmul.f32 0.7978846, %v1072_v58 }
 0x25d   : > { %3328 = vtanh.f32 %v1073_v59 }
 0x25e   : > { %3330 = vtanh.f32 %v1074_v60 }
 0x267   : > { %v3329_v61 = vpop.eup %3328 }
 0x268   : > { %v3331_v62 = vpop.eup %3330  ;;  %v1077_v63 = vadd.f32 1.0, %v3329_v61 }
 0x269   : > { %v1078_v0 = vadd.f32 1.0, %v3331_v62 }
 0x26a   : > { %v1079_v1 = vmul.f32 0.5, %v1077_v63 }
 0x26b   : > { %v1080_v2 = vmul.f32 0.5, %v1078_v0 }
 0x26c   : > { %v4151_v3 = vmul.f32 %v1079_v1, %v1059_v46  ;;  %v3272_v1 = vld [vmem:[#allocation10 + $0x40] sm:$0xff]  }
 0x26d   : > { %v4153_v4 = vmul.f32 %v1080_v2, %v1061_v48  ;;  %v1083_v48 = vld [vmem:[#allocation6] sm:$0x3]  ;;  %v3273_v2 = vld [vmem:[#allocation10 + $0x80] sm:$0xff]   ;;  %2889 = vmatprep.subr.bf16.mxu0 %v3272_v1 }
 0x26e   : > { %v1089_v6 = vmul.f32 %v4151_v3, %v4151_v3  ;;  %v1107_v52 = vrot.slane %v1083_v48, %v4144_v40  ;;  %v1111_v53 = vrot.slane %v1083_v48, %v4147_v42  ;;  %v3281_v1 = vld [vmem:[#allocation10 + $0x58] sm:$0xff]  }
 0x26f   : > { %v1085_v5 = vadd.f32 %v4153_v4, %v4151_v3  ;;  %v1090_v7 = vmul.f32 %v4153_v4, %v4153_v4 }
 0x271   : > { %1086 = vadd.xlane.f32.xlu0 %v1085_v5  ;;  %v1091_v8 = vadd.f32 %v1090_v7, %v1089_v6  ;;  %v1195_v5 = vld [vmem:[%s4410_s17] sm:$0x7]  ;;  %v4173_v6 = vsub.s32 2, %v4141_v39 }
 0x272   : > { %v1200_v7 = vrot.slane %v1195_v5, %v4144_v40 }
 0x273   : > { %v1208_v11 = vrot.slane %v1195_v5, %v4173_v6 }
 0x275   : > { %1092 = vadd.xlane.f32.xlu0 %v1091_v8  ;;  %v1204_v8 = vrot.slane %v1195_v5, %v4147_v42  ;;  %v3284_v5 = vld [vmem:[#allocation10 + $0x60] sm:$0xff]  }
 0x2fe   : > { %v1087_v37 = vpop.xlane.xlu0 %1086 }
 0x2ff   : > { %v1088_v41 = vmul.f32 0.005, %v1087_v37 }
 0x301   : > { %v1095_v44 = vmul.f32 %v1088_v41, %v1088_v41  ;;  %v1097_v50 = vsub.f32 %v4151_v3, %v1088_v41  ;;  %v1098_v51 = vsub.f32 %v4153_v4, %v1088_v41  ;;  %v3274_v3 = vld [vmem:[#allocation10] sm:$0xff]   ;;  %v3716_v4 = vmov 0.0  }
 0x302   : > { %v1093_v43 = vpop.xlane.xlu0 %1092  ;;  %2956 = vmatprep.subr.bf16.mxu1 %v3716_v4 }
 0x303   : > { %v1094_v45 = vmul.f32 0.005, %v1093_v43 }
 0x305   : > { %v1096_v46 = vsub.f32 %v1094_v45, %v1095_v44 }
 0x307   : > { %v1099_v47 = vadd.f32 1e-05, %v1096_v46 }
 0x309   : > { %3332 = vrsqrt.f32 %v1099_v47 }
 0x313   : > { %v3333_v54 = vpop.eup %3332 }
 0x314   : > { %v1102_v55 = vmul.f32 %v3333_v54, %v1098_v51  ;;  %v1101_v58 = vmul.f32 %v3333_v54, %v1097_v50 }
 0x316   : > { %v1115_v59 = vmul.f32 %v1111_v53, %v1102_v55  ;;  %v1114_v60 = vmul.f32 %v1107_v52, %v1101_v58 }
 0x318   : > { %v1128_v61 = vadd.f32 %v1124_v57, %v1115_v59  ;;  %v1127_v62 = vadd.f32 %v1120_v56, %v1114_v60  ;;  %v3275_v59 = vld [vmem:[#allocation10 + $0x48] sm:$0xff]  }
 0x319   : > { %v3276_v60 = vld [vmem:[#allocation10 + $0x88] sm:$0xff]  }
 0x31a   : > { %v1130_v63 = vpack.c.bf16 %v1128_v61, %v1128_v61  ;;  %v1129_v0 = vpack.c.bf16 %v1127_v62, %v1127_v62  ;;  %v3277_v61 = vld [vmem:[#allocation10 + $0x8] sm:$0xff]   ;;  %v3278_v62 = vld [vmem:[#allocation10 + $0x50] sm:$0xff]  }
 0x31c   : > { %1500 = vmatprep.mubr.bf16.mxu1 %v1130_v63  ;;  %1541 = vmatprep.mubr.bf16.mxu0 %v1130_v63  ;;  %v3279_v63 = vld [vmem:[#allocation10 + $0x90] sm:$0xff]  }
 0x31d   : > { %1501 = vmatmul.mubr.bf16.vlgmr.msra.gmra.mrb[0].mxu1 %v1129_v0  ;;  %1542 = vmatmul.mubr.bf16.vlgmr.msra.gmra.mrb[4].mxu0 %v1129_v0  ;;  %v3280_v0 = vld [vmem:[#allocation10 + $0x10] sm:$0xff]  }
 0x31e   : > { %2957 = vmatpush3.bf16.msra.mxu1 %v3273_v2  ;;  %2890 = vmatpush3.bf16.msra.mxu0 %v3274_v3  ;;  %v3282_v2 = vld [vmem:[#allocation10 + $0x98] sm:$0xff]  }
 0x31f   : > { %2958 = vmatprep.subr.bf16.mxu1 %v3716_v4  ;;  %2891 = vmatprep.subr.bf16.mxu0 %v3275_v59  ;;  %v3283_v3 = vld [vmem:[#allocation10 + $0x18] sm:$0xff]  }
 0x320   : > { %2972 = vmatprep.mubr.msk.bf16.mxu1 %vm3717_vm0, %v3716_v4 }
 0x322   : > { %2959 = vmatpush3.bf16.msra.mxu1 %v3276_v60  ;;  %2892 = vmatpush3.bf16.msra.mxu0 %v3277_v61 }
 0x323   : > { %2960 = vmatprep.subr.bf16.mxu1 %v3716_v4  ;;  %2893 = vmatprep.subr.bf16.mxu0 %v3278_v62 }
 0x326   : > { %2961 = vmatpush3.bf16.msra.mxu1 %v3279_v63  ;;  %2894 = vmatpush3.bf16.msra.mxu0 %v3280_v0 }
 0x327   : > { %2962 = vmatprep.subr.bf16.mxu1 %v3716_v4  ;;  %2895 = vmatprep.subr.bf16.mxu0 %v3281_v1 }
 0x32a   : > { %2963 = vmatpush3.bf16.msra.mxu1 %v3282_v2  ;;  %2896 = vmatpush3.bf16.msra.mxu0 %v3283_v3 }
 0x32b   : > { %2964 = vmatprep.subr.bf16.mxu1 %v3716_v4  ;;  %2897 = vmatprep.subr.bf16.mxu0 %v3284_v5 }
 0x3f0   : > { %v1502_v9 = vpop.f32.mrb[0].mxu1  ;;  %v2883_v10 = vpop.f32.mrb[4].mxu0 }
 0x3f1   : > { %v1503_v12 = vadd.f32 %v1502_v9, %v1200_v7  ;;  %v1504_v13 = vpop.f32.mrb[1].mxu1  ;;  %v2884_v14 = vpop.f32.mrb[5].mxu0  ;;  %v3285_v7 = vld [vmem:[#allocation10 + $0xa0] sm:$0xff]   ;;  %v3287_v9 = vld [vmem:[#allocation10 + $0x68] sm:$0xff]  }
 0x3f2   : > { %v1505_v15 = vadd.f32 %v1504_v13, %v1204_v8  ;;  %v2885_v16 = vadd.f32 %v2884_v14, %v2883_v10  ;;  %v1506_v17 = vpop.f32.mrb[2].mxu1  ;;  %v2886_v18 = vpop.f32.mrb[6].mxu0  ;;  %v3286_v8 = vld [vmem:[#allocation10 + $0x20] sm:$0xff]   ;;  %2965 = vmatpush3.bf16.msra.mxu1 %v3285_v7  ;;  %v3288_v10 = vld [vmem:[#allocation10 + $0xa8] sm:$0xff]   ;;  %v3291_v13 = vld [vmem:[#allocation10 + $0xb0] sm:$0xff]  }
 0x3f3   : > { %v1549_v19 = vmul.f32 %v1503_v12, %v1503_v12  ;;  %v1507_v20 = vpop.f32.mrb[3].mxu1  ;;  %v2887_v21 = vpop.f32.mrb[7].mxu0  ;;  %2898 = vmatpush3.bf16.msra.mxu0 %v3286_v8  ;;  %2966 = vmatprep.subr.bf16.mxu1 %v3716_v4  ;;  %v3292_v14 = vld [vmem:[#allocation10 + $0x30] sm:$0xff]   ;;  %v3295_v17 = vld [vmem:[#allocation10 + $0x38] sm:$0xff]  }
 0x3f4   : > { %v1550_v39 = vmul.f32 %v1505_v15, %v1505_v15  ;;  %v1544_v22 = vadd.f32 %v2885_v16, %v1208_v11  ;;  %v3289_v11 = vld [vmem:[#allocation10 + $0x28] sm:$0xff]   ;;  %2899 = vmatprep.subr.bf16.mxu0 %v3287_v9  ;;  %v3294_v16 = vld [vmem:[#allocation10 + $0xb8] sm:$0xff]  }
 0x3f5   : > { %v1552_v23 = vmul.f32 %v1549_v19, %v1503_v12 }
 0x3f6   : > { %v1553_v24 = vmul.f32 %v1550_v39, %v1505_v15  ;;  %v1551_v25 = vmul.f32 %v1544_v22, %v1544_v22  ;;  %2967 = vmatpush3.bf16.msra.mxu1 %v3288_v10  ;;  %v3297_v10 = vld [vmem:[%s4337_s13 + $0x8] sm:$0xff]  }
 0x3f7   : > { %v1555_v26 = vmul.f32 0.044715, %v1552_v23  ;;  %2900 = vmatpush3.bf16.msra.mxu0 %v3289_v11  ;;  %2968 = vmatprep.subr.bf16.mxu1 %v3716_v4  ;;  %v3298_v11 = vld [vmem:[%s4337_s13 + $0x10] sm:$0xff]  }
 0x3f8   : > { %v1556_v27 = vmul.f32 0.044715, %v1553_v24  ;;  %v1554_v28 = vmul.f32 %v1551_v25, %v1544_v22  ;;  %v1576_v24 = vld [vmem:[%s4411_s21] sm:$0x7] }
 0x3f9   : > { %v1558_v29 = vadd.f32 %v1555_v26, %v1503_v12  ;;  %v1577_v25 = vld [vmem:[%s4412_s25] sm:$0x7]  ;;  %v1609_v26 = vrot.slane %v1576_v24, %v4147_v42 }
 0x3fa   : > { %v1559_v30 = vadd.f32 %v1556_v27, %v1505_v15  ;;  %v1557_v31 = vmul.f32 0.044715, %v1554_v28  ;;  %2969 = vmatpush3.bf16.msra.mxu1 %v3291_v13  ;;  %v1613_v27 = vrot.slane %v1576_v24, %v4173_v6  ;;  %v3300_v13 = vld [vmem:[%s4337_s13 + $0x20] sm:$0xff]  }
 0x3fb   : > { %v1561_v32 = vmul.f32 0.7978846, %v1558_v29  ;;  %2970 = vmatprep.subr.bf16.mxu1 %v3716_v4 }
 0x3fc   : > { %v1562_v33 = vmul.f32 0.7978846, %v1559_v30  ;;  %v1560_v34 = vadd.f32 %v1557_v31, %v1544_v22  ;;  %v1605_v31 = vrot.slane %v1576_v24, %v4144_v40 }
 0x3fd   : > { %3334 = vtanh.f32 %v1561_v32 }
 0x3fe   : > { %3336 = vtanh.f32 %v1562_v33  ;;  %v1563_v35 = vmul.f32 0.7978846, %v1560_v34  ;;  %2971 = vmatpush3.bf16.msra.mxu1 %v3294_v16  ;;  %v1628_v33 = vrot.slane %v1577_v25, %v4147_v42  ;;  %v1632_v34 = vrot.slane %v1577_v25, %v4173_v6  ;;  %v3303_v16 = vld [vmem:[%s4337_s13 + $0x38] sm:$0xff]  }
 0x3ff   : > { %2996 = vmatprep.subr.bf16.mxu1 %v3716_v4 }
 0x400   : > { %3338 = vtanh.f32 %v1563_v35 }
 0x407   : > { %v3335_v36 = vpop.eup %3334 }
 0x408   : > { %v3337_v37 = vpop.eup %3336  ;;  %v1567_v41 = vadd.f32 1.0, %v3335_v36 }
 0x409   : > { %v1568_v43 = vadd.f32 1.0, %v3337_v37 }
 0x40a   : > { %v3339_v44 = vpop.eup %3338  ;;  %v1570_v45 = vmul.f32 0.5, %v1567_v41  ;;  %v1624_v41 = vrot.slane %v1577_v25, %v4144_v40  ;;  %v3296_v40 = vld [vmem:[%s4337_s13] sm:$0xff]  }
 0x40b   : > { %v1569_v46 = vadd.f32 1.0, %v3339_v44  ;;  %v1571_v47 = vmul.f32 0.5, %v1568_v43  ;;  %v2826_v25 = vld [vmem:[#allocation12] ss:$0 sm:$0xff] }
 0x40c   : > { %v4178_v48 = vmul.f32 %v1570_v45, %v1503_v12  ;;  %v3290_v12 = vld [vmem:[#allocation10 + $0x70] sm:$0xff]  }
 0x40d   : > { %v1572_v49 = vmul.f32 0.5, %v1569_v46  ;;  %v4180_v50 = vmul.f32 %v1571_v47, %v1505_v15  ;;  %2901 = vmatprep.subr.bf16.mxu0 %v3290_v12  ;;  %v3293_v15 = vld [vmem:[#allocation10 + $0x78] sm:$0xff]  }
 0x40e   : > { %v1583_v51 = vmul.f32 %v4178_v48, %v4178_v48  ;;  %2902 = vmatpush3.bf16.msra.mxu0 %v3292_v14  ;;  %v3299_v12 = vld [vmem:[%s4337_s13 + $0x18] sm:$0xff]   ;;  %v3301_v14 = vld [vmem:[%s4337_s13 + $0x28] sm:$0xff]  }
 0x40f   : > { %v4184_v52 = vmul.f32 %v1572_v49, %v1544_v22  ;;  %v1578_v53 = vadd.f32 %v4180_v50, %v4178_v48  ;;  %v1584_v54 = vmul.f32 %v4180_v50, %v4180_v50  ;;  %2903 = vmatprep.subr.bf16.mxu0 %v3293_v15  ;;  %v3302_v15 = vld [vmem:[%s4337_s13 + $0x30] sm:$0xff]  }
 0x411   : > { %v1579_v55 = vadd.f32 %v1578_v53, %v4184_v52  ;;  %v1585_v56 = vmul.f32 %v4184_v52, %v4184_v52  ;;  %v1586_v57 = vadd.f32 %v1584_v54, %v1583_v51  ;;  %v2801_v53 = vld [vmem:[%s4334_s10] ss:$0 sm:$0xff] }
 0x412   : > { %2904 = vmatpush3.bf16.msra.mxu0 %v3295_v17 }
 0x413   : > { %1580 = vadd.xlane.f32.xlu1 %v1579_v55  ;;  %v1587_v58 = vadd.f32 %v1586_v57, %v1585_v56  ;;  %2976 = vmatprep.subr.bf16.mxu0 %v3716_v4 }
 0x417   : > { %1588 = vadd.xlane.f32.xlu1 %v1587_v58 }
 0x4a0   : > { %v1581_v18 = vpop.xlane.xlu1 %1580 }
 0x4a1   : > { %v1582_v19 = vmul.f32 0.0026041667, %v1581_v18 }
 0x4a3   : > { %v1591_v21 = vmul.f32 %v1582_v19, %v1582_v19  ;;  %v1593_v28 = vsub.f32 %v4178_v48, %v1582_v19  ;;  %v1594_v29 = vsub.f32 %v4180_v50, %v1582_v19  ;;  %v1595_v30 = vsub.f32 %v4184_v52, %v1582_v19 }
 0x4a4   : > { %v1589_v20 = vpop.xlane.xlu1 %1588 }
 0x4a5   : > { %v1590_v39 = vmul.f32 0.0026041667, %v1589_v20 }
 0x4a7   : > { %v1592_v22 = vsub.f32 %v1590_v39, %v1591_v21 }
 0x4a9   : > { %v1596_v23 = vadd.f32 1e-05, %v1592_v22 }
 0x4ab   : > { %3340 = vrsqrt.f32 %v1596_v23 }
 0x4b5   : > { %v3341_v32 = vpop.eup %3340 }
 0x4b6   : > { %v1599_v35 = vmul.f32 %v3341_v32, %v1594_v29  ;;  %v1600_v36 = vmul.f32 %v3341_v32, %v1595_v30  ;;  %v1598_v37 = vmul.f32 %v3341_v32, %v1593_v28  ;;  %v3305_v32 = vld [vmem:[#allocation15 + $0x8] sm:$0xff]  }
 0x4b8   : > { %v1618_v43 = vmul.f32 %v1609_v26, %v1599_v35  ;;  %v1619_v44 = vmul.f32 %v1613_v27, %v1600_v36  ;;  %v1617_v45 = vmul.f32 %v1605_v31, %v1598_v37  ;;  %v2827_v27 = vld [vmem:[#allocation13] ss:$0 sm:$0xff]  ;;  %v3304_v31 = vld [vmem:[#allocation15] sm:$0xff]   ;;  %v3309_v36 = vld [vmem:[#allocation15 + $0x28] sm:$0xff]  }
 0x4b9   : > { %v3308_v35 = vld [vmem:[#allocation15 + $0x20] sm:$0xff]   ;;  %v3310_v37 = vld [vmem:[#allocation15 + $0x30] sm:$0xff]  }
 0x4ba   : > { %v1637_v46 = vadd.f32 %v1628_v33, %v1618_v43  ;;  %v1638_v47 = vadd.f32 %v1632_v34, %v1619_v44  ;;  %v1636_v48 = vadd.f32 %v1624_v41, %v1617_v45  ;;  %v3306_v33 = vld [vmem:[#allocation15 + $0x10] sm:$0xff]   ;;  %v3307_v34 = vld [vmem:[#allocation15 + $0x18] sm:$0xff]  }
 0x4bb   : > { %v3311_v41 = vld [vmem:[#allocation15 + $0x38] sm:$0xff]   ;;  %v2828_v43 = vld [vmem:[%s4338_s14] ss:$0 sm:$0xff] }
 0x4bc   : > { %v1640_v49 = vpack.c.bf16 %v1637_v46, %v1637_v46  ;;  %v1641_v50 = vpack.c.bf16 %v1638_v47, %v1638_v47  ;;  %v1639_v51 = vpack.c.bf16 %v1636_v48, %v1636_v48 }
 0x4be   : > { %1873 = vmatprep.mubr.bf16.mxu0 %v1640_v49  ;;  %2973 = vmatmul.mubr.bf16.vlgmr.msra.gmra.mrb[4].mxu1 %v1641_v50 }
 0x4bf   : > { %1874 = vmatmul.mubr.bf16.vlgmr.msra.gmra.mrb[8].mxu0 %v1639_v51  ;;  %3012 = vmatprep.mubr.msk.bf16.mxu1 %vm3717_vm0, %v3716_v4 }
 0x4c0   : > { %2992 = vmatprep.mubr.msk.bf16.mxu0 %vm3717_vm0, %v3716_v4  ;;  %2977 = vmatpush3.bf16.msra.mxu0 %v3296_v40 }
 0x4c1   : > { %2978 = vmatprep.subr.bf16.mxu0 %v3716_v4  ;;  %2997 = vmatpush3.bf16.msra.mxu1 %v3304_v31 }
 0x4c2   : > { %2998 = vmatprep.subr.bf16.mxu1 %v3716_v4 }
 0x4c4   : > { %2979 = vmatpush3.bf16.msra.mxu0 %v3297_v10 }
 0x4c5   : > { %2980 = vmatprep.subr.bf16.mxu0 %v3716_v4  ;;  %2999 = vmatpush3.bf16.msra.mxu1 %v3305_v32 }
 0x4c6   : > { %3000 = vmatprep.subr.bf16.mxu1 %v3716_v4 }
 0x4c8   : > { %2981 = vmatpush3.bf16.msra.mxu0 %v3298_v11 }
 0x4c9   : > { %2982 = vmatprep.subr.bf16.mxu0 %v3716_v4  ;;  %3001 = vmatpush3.bf16.msra.mxu1 %v3306_v33 }
 0x4ca   : > { %3002 = vmatprep.subr.bf16.mxu1 %v3716_v4 }
 0x4cc   : > { %2983 = vmatpush3.bf16.msra.mxu0 %v3299_v12 }
 0x4cd   : > { %2984 = vmatprep.subr.bf16.mxu0 %v3716_v4  ;;  %3003 = vmatpush3.bf16.msra.mxu1 %v3307_v34 }
 0x4ce   : > { %3004 = vmatprep.subr.bf16.mxu1 %v3716_v4 }
 0x4d0   : > { %2985 = vmatpush3.bf16.msra.mxu0 %v3300_v13 }
 0x4d1   : > { %2986 = vmatprep.subr.bf16.mxu0 %v3716_v4  ;;  %3005 = vmatpush3.bf16.msra.mxu1 %v3308_v35 }
 0x4d2   : > { %3006 = vmatprep.subr.bf16.mxu1 %v3716_v4 }
 0x4d4   : > { %2987 = vmatpush3.bf16.msra.mxu0 %v3301_v14  ;;  %v3320_v14 = vld [vmem:[#allocation18] sm:$0xff]  }
 0x4d5   : > { %2988 = vmatprep.subr.bf16.mxu0 %v3716_v4  ;;  %3007 = vmatpush3.bf16.msra.mxu1 %v3309_v36  ;;  %v2433_v36 = vand.u32 127, %v934_v38 }
 0x4d6   : > { %3008 = vmatprep.subr.bf16.mxu1 %v3716_v4 }
 0x4d7   : > { %vm2434_vm1 = vcmp.lt.s32.totalorder %v2433_v36, 50 }
 0x4d8   : > { %2989 = vmatpush3.bf16.msra.mxu0 %v3302_v15  ;;  %v3321_v15 = vld [vmem:[#allocation18 + $0x8] sm:$0xff]  }
 0x4d9   : > { %2990 = vmatprep.subr.bf16.mxu0 %v3716_v4  ;;  %3009 = vmatpush3.bf16.msra.mxu1 %v3310_v37  ;;  %v2856_v37 = vld [vmem:[%s4417_s7] ss:$0 sm:$0xff] }
 0x4da   : > { %3010 = vmatprep.subr.bf16.mxu1 %v3716_v4 }
 0x4dc   : > { %2991 = vmatpush3.bf16.msra.mxu0 %v3303_v16  ;;  %v3322_v16 = vld [vmem:[#allocation18 + $0x10] sm:$0xff]  }
 0x4dd   : > { %3016 = vmatprep.subr.bf16.mxu0 %v3716_v4  ;;  %3011 = vmatpush3.bf16.msra.mxu1 %v3311_v41 }
 0x4de   : > { %3036 = vmatprep.subr.bf16.mxu1 %v3716_v4 }
 0x591   : > { %v1915_v42 = vpop.f32.mrb[4].mxu1 }
 0x592   : > { %v2905_v6 = vpop.f32.mrb[8].mxu0  ;;  %v2974_v52 = vpop.f32.mrb[5].mxu1 }
 0x593   : > { %v2906_v54 = vpop.f32.mrb[9].mxu0  ;;  %v1918_v55 = vpop.f32.mrb[6].mxu1 }
 0x594   : > { %v2907_v56 = vadd.f32 %v2906_v54, %v2905_v6  ;;  %v2908_v57 = vpop.f32.mrb[10].mxu0  ;;  %v2975_v58 = vpop.f32.mrb[7].mxu1 }
 0x595   : > { %v2909_v59 = vpop.f32.mrb[11].mxu0  ;;  %v3313_v57 = vld [vmem:[#allocation16 + $0x8] sm:$0xff]   ;;  %v3314_v58 = vld [vmem:[#allocation16 + $0x10] sm:$0xff]  }
 0x596   : > { %v1876_v60 = vadd.f32 %v2907_v56, %v2801_v53  ;;  %v3312_v56 = vld [vmem:[#allocation16] sm:$0xff]   ;;  %v3315_v59 = vld [vmem:[#allocation16 + $0x18] sm:$0xff]  }
 0x598   : > { %v1916_v61 = vadd.f32 %v1915_v42, %v1876_v60  ;;  %v3316_v60 = vld [vmem:[#allocation16 + $0x20] sm:$0xff]  }
 0x59a   : > { %v1921_v62 = vmul.f32 %v1916_v61, %v1916_v61 }
 0x59c   : > { %v1922_v63 = vmul.f32 %v1921_v62, %v1916_v61  ;;  %v3318_v62 = vld [vmem:[#allocation16 + $0x30] sm:$0xff]  }
 0x59e   : > { %v1923_v0 = vmul.f32 0.044715, %v1922_v63  ;;  %v3319_v63 = vld [vmem:[#allocation16 + $0x38] sm:$0xff]  }
 0x5a0   : > { %v1924_v1 = vadd.f32 %v1923_v0, %v1916_v61  ;;  %v2837_v0 = vld [vmem:[%s4413_s16] ss:$0 sm:$0xff] }
 0x5a2   : > { %v1925_v2 = vmul.f32 0.7978846, %v1924_v1 }
 0x5a4   : > { %3342 = vtanh.f32 %v1925_v2 }
 0x5ae   : > { %v3343_v3 = vpop.eup %3342 }
 0x5af   : > { %v1927_v5 = vadd.f32 1.0, %v3343_v3 }
 0x5b1   : > { %v1928_v7 = vmul.f32 0.5, %v1927_v5 }
 0x5b3   : > { %v1929_v8 = vmul.f32 %v1928_v7, %v1916_v61  ;;  %v3317_v61 = vld [vmem:[#allocation16 + $0x28] sm:$0xff]  }
 0x5b5   : > { %1932 = vadd.xlane.f32.xlu0 %v1929_v8  ;;  %v1935_v9 = vmul.f32 %v1929_v8, %v1929_v8 }
 0x5b7   : > { %1936 = vadd.xlane.f32.xlu1 %v1935_v9 }
 0x642   : > { %v1933_v17 = vpop.xlane.xlu0 %1932 }
 0x643   : > { %v1934_v18 = vmul.f32 0.02, %v1933_v17  ;;  %v3323_v17 = vld [vmem:[#allocation18 + $0x18] sm:$0xff]  }
 0x644   : > { %v1937_v19 = vpop.xlane.xlu1 %1936 }
 0x645   : > { %v1939_v20 = vmul.f32 %v1934_v18, %v1934_v18  ;;  %v1938_v21 = vmul.f32 0.02, %v1937_v19  ;;  %v1941_v23 = vsub.f32 %v1929_v8, %v1934_v18  ;;  %v3324_v18 = vld [vmem:[#allocation18 + $0x20] sm:$0xff]   ;;  %v3325_v19 = vld [vmem:[#allocation18 + $0x28] sm:$0xff]  }
 0x647   : > { %v1940_v39 = vsub.f32 %v1938_v21, %v1939_v20  ;;  %v3326_v20 = vld [vmem:[#allocation18 + $0x30] sm:$0xff]   ;;  %v3327_v21 = vld [vmem:[#allocation18 + $0x38] sm:$0xff]  }
 0x649   : > { %v1942_v22 = vadd.f32 1e-05, %v1940_v39  ;;  %v2847_v39 = vld [vmem:[%s4416_s26] ss:$0 sm:$0xff] }
 0x64b   : > { %3344 = vrsqrt.f32 %v1942_v22 }
 0x655   : > { %v3345_v24 = vpop.eup %3344 }
 0x656   : > { %v1944_v26 = vmul.f32 %v3345_v24, %v1941_v23 }
 0x658   : > { %v1951_v28 = vmul.f32 %v2826_v25, %v1944_v26 }
 0x65a   : > { %v4264_v29 = vadd.f32 %v2827_v27, %v1951_v28 }
 0x65c   : > { %v1959_v30 = vpack.c.bf16 %v4264_v29, %v4264_v29  ;;  %2451 = vst [vmem:[%s913_s18] sm:$0xff] %v4264_v29 }
 0x65e   : > { %2993 = vmatmul.mubr.bf16.vlgmr.msra.gmra.mrb[12].mxu0 %v1959_v30 }
 0x65f   : > { %3032 = vmatprep.mubr.msk.bf16.mxu0 %vm3717_vm0, %v3716_v4  ;;  %3017 = vmatpush3.bf16.msra.mxu0 %v3312_v56 }
 0x660   : > { %3018 = vmatprep.subr.bf16.mxu0 %v3716_v4 }
 0x663   : > { %3019 = vmatpush3.bf16.msra.mxu0 %v3313_v57 }
 0x664   : > { %3020 = vmatprep.subr.bf16.mxu0 %v3716_v4 }
 0x667   : > { %3021 = vmatpush3.bf16.msra.mxu0 %v3314_v58 }
 0x668   : > { %3022 = vmatprep.subr.bf16.mxu0 %v3716_v4 }
 0x66b   : > { %3023 = vmatpush3.bf16.msra.mxu0 %v3315_v59 }
 0x66c   : > { %3024 = vmatprep.subr.bf16.mxu0 %v3716_v4 }
 0x66f   : > { %3025 = vmatpush3.bf16.msra.mxu0 %v3316_v60 }
 0x670   : > { %3026 = vmatprep.subr.bf16.mxu0 %v3716_v4 }
 0x673   : > { %3027 = vmatpush3.bf16.msra.mxu0 %v3317_v61 }
 0x674   : > { %3028 = vmatprep.subr.bf16.mxu0 %v3716_v4 }
 0x677   : > { %3029 = vmatpush3.bf16.msra.mxu0 %v3318_v62 }
 0x678   : > { %3030 = vmatprep.subr.bf16.mxu0 %v3716_v4 }
 0x67b   : > { %3031 = vmatpush3.bf16.msra.mxu0 %v3319_v63 }
 0x731   : > { %v2065_v44 = vpop.f32.mrb[12].mxu0 }
 0x732   : > { %v2066_v45 = vadd.f32 %v2828_v43, %v2065_v44  ;;  %v2994_v46 = vpop.f32.mrb[13].mxu0 }
 0x733   : > { %v2068_v47 = vpop.f32.mrb[14].mxu0 }
 0x734   : > { %v2071_v48 = vmul.f32 %v2066_v45, %v2066_v45  ;;  %v2995_v49 = vpop.f32.mrb[15].mxu0 }
 0x736   : > { %v2072_v50 = vmul.f32 %v2071_v48, %v2066_v45 }
 0x738   : > { %v2073_v51 = vmul.f32 0.044715, %v2072_v50 }
 0x73a   : > { %v2074_v40 = vadd.f32 %v2073_v51, %v2066_v45 }
 0x73c   : > { %v2075_v42 = vmul.f32 0.7978846, %v2074_v40 }
 0x73e   : > { %3346 = vtanh.f32 %v2075_v42 }
 0x748   : > { %v3347_v6 = vpop.eup %3346 }
 0x749   : > { %v2077_v52 = vadd.f32 1.0, %v3347_v6 }
 0x74b   : > { %v2078_v53 = vmul.f32 0.5, %v2077_v52 }
 0x74d   : > { %v2079_v54 = vmul.f32 %v2078_v53, %v2066_v45 }
 0x74f   : > { %v2080_v55 = vpack.c.bf16 %v2079_v54, %v2079_v54 }
 0x751   : > { %3013 = vmatmul.mubr.bf16.vlgmr.msra.gmra.mrb[8].mxu1 %v2080_v55 }
 0x752   : > { %3052 = vmatprep.mubr.msk.bf16.mxu1 %vm3717_vm0, %v3716_v4  ;;  %3037 = vmatpush3.bf16.msra.mxu1 %v3320_v14 }
 0x753   : > { %3038 = vmatprep.subr.bf16.mxu1 %v3716_v4 }
 0x756   : > { %3039 = vmatpush3.bf16.msra.mxu1 %v3321_v15 }
 0x757   : > { %3040 = vmatprep.subr.bf16.mxu1 %v3716_v4 }
 0x75a   : > { %3041 = vmatpush3.bf16.msra.mxu1 %v3322_v16 }
 0x75b   : > { %3042 = vmatprep.subr.bf16.mxu1 %v3716_v4 }
 0x75e   : > { %3043 = vmatpush3.bf16.msra.mxu1 %v3323_v17 }
 0x75f   : > { %3044 = vmatprep.subr.bf16.mxu1 %v3716_v4 }
 0x762   : > { %3045 = vmatpush3.bf16.msra.mxu1 %v3324_v18 }
 0x763   : > { %3046 = vmatprep.subr.bf16.mxu1 %v3716_v4 }
 0x766   : > { %3047 = vmatpush3.bf16.msra.mxu1 %v3325_v19 }
 0x767   : > { %3048 = vmatprep.subr.bf16.mxu1 %v3716_v4 }
 0x76a   : > { %3049 = vmatpush3.bf16.msra.mxu1 %v3326_v20 }
 0x76b   : > { %3050 = vmatprep.subr.bf16.mxu1 %v3716_v4 }
 0x76e   : > { %3051 = vmatpush3.bf16.msra.mxu1 %v3327_v21 }
 0x824   : > { %v2186_v1 = vpop.f32.mrb[8].mxu1 }
 0x825   : > { %v2187_v2 = vadd.f32 %v2837_v0, %v2186_v1  ;;  %v3014_v3 = vpop.f32.mrb[9].mxu1 }
 0x826   : > { %v2189_v5 = vpop.f32.mrb[10].mxu1 }
 0x827   : > { %v2846_v7 = vmul.f32 -1.442695, %v2187_v2  ;;  %v3015_v8 = vpop.f32.mrb[11].mxu1 }
 0x829   : > { %3348 = vpow2.f32 %v2846_v7 }
 0x833   : > { %v3349_v9 = vpop.eup %3348 }
 0x834   : > { %v2195_v10 = vadd.f32 1.0, %v3349_v9 }
 0x836   : > { %3350 = vrcp.f32 %v2195_v10 }
 0x840   : > { %v3351_v11 = vpop.eup %3350 }
 0x841   : > { %2449 = vst [vmem:[%s905_s30] sm:$0xff] %v3351_v11  ;;  %v2198_v12 = vmul.f32 %v3351_v11, %v4264_v29 }
 0x843   : > { %v2199_v13 = vpack.c.bf16 %v2198_v12, %v2198_v12  ;;  %2448 = vst [vmem:[%s901_s27] sm:$0xff] %v2198_v12 }
 0x845   : > { %3033 = vmatmul.mubr.bf16.vlgmr.msra.gmra.mrb[16].mxu0 %v2199_v13 }
 0x918   : > { %v2305_v22 = vpop.f32.mrb[16].mxu0 }
 0x919   : > { %v2306_v23 = vadd.f32 %v2847_v39, %v2305_v22  ;;  %v3034_v24 = vpop.f32.mrb[17].mxu0 }
 0x91a   : > { %v2308_v25 = vpop.f32.mrb[18].mxu0 }
 0x91b   : > { %v2311_v26 = vmul.f32 %v2306_v23, %v2306_v23  ;;  %v3035_v27 = vpop.f32.mrb[19].mxu0 }
 0x91d   : > { %v2312_v28 = vmul.f32 %v2311_v26, %v2306_v23 }
 0x91f   : > { %v2313_v29 = vmul.f32 0.044715, %v2312_v28 }
 0x921   : > { %v2314_v30 = vadd.f32 %v2313_v29, %v2306_v23 }
 0x923   : > { %v2315_v31 = vmul.f32 0.7978846, %v2314_v30 }
 0x925   : > { %3352 = vtanh.f32 %v2315_v31 }
 0x92f   : > { %v3353_v32 = vpop.eup %3352 }
 0x930   : > { %v2317_v33 = vadd.f32 1.0, %v3353_v32 }
 0x932   : > { %v2318_v34 = vmul.f32 0.5, %v2317_v33 }
 0x934   : > { %v2319_v4 = vmul.f32 %v2318_v34, %v2306_v23 }
 0x936   : > { %v2320_v35 = vpack.c.bf16 %v2319_v4, %v2319_v4 }
 0x938   : > { %3053 = vmatmul.mubr.bf16.vlgmr.msra.gmra.mrb[12].mxu1 %v2320_v35 }
 0xa0b   : > { %v2426_v41 = vpop.f32.mrb[12].mxu1 }
 0xa0c   : > { %v2427_v43 = vadd.f32 %v2856_v37, %v2426_v41  ;;  %v3054_v44 = vpop.f32.mrb[13].mxu1 }
 0xa0d   : > { %v2429_v45 = vpop.f32.mrb[14].mxu1 }
 0xa0e   : > { %v3055_v46 = vpop.f32.mrb[15].mxu1  ;;  %v2437_v47 = vsel %vm2434_vm1, %v2427_v43, -1e+30 }
 0xa0f   : > { %2438 = vmax.xlane.f32.xlu0 %v2437_v47 }
 0xa9c   : > { %v2439_v48 = vpop.xlane.xlu0 %2438 }
 0xa9d   : > { %v2440_v49 = vsub.f32 %v2437_v47, %v2439_v48 }
 0xa9f   : > { %v2441_v50 = vmul.f32 1.442695, %v2440_v49 }
 0xaa1   : > { %3354 = vpow2.f32 %v2441_v50 }
 0xaab   : > { %v3355_v51 = vpop.eup %3354 }
 0xaac   : > { %v2443_v40 = vsel %vm2434_vm1, %v3355_v51, 0.0 }
 0xaad   : > { %2444 = vadd.xlane.f32.xlu1 %v2443_v40 }
 0xb3a   : > { %v2445_v38 = vpop.xlane.xlu1 %2444 }
 0xb3b   : > { %3356 = vrcp.f32 %v2445_v38 }
 0xb45   : > { %v3357_v42 = vpop.eup %3356 }
 0xb46   : > { %v2447_v6 = vmul.f32 %v3357_v42, %v2443_v40 }
 0xb48   : > { %2450 = vst [vmem:[%s909_s3] sm:$0xff] %v2447_v6 }
 0xb49 PF: > { %s4419_s12 = sld [smem:[#allocation25_spill]] }
 0xb4f   : > { %s41_s5 = sadd.s32 1, %s4419_s12  }
 0xb50   : > { %p38_p2 = scmp.ge.s32.totalorder %s41_s5, 4  }
 0xb52   :  { %40 = sbr.rel (!%p38_p2) target bundleno = 25 (0x19), region = 215 }
 0xb59   :  { %2513 = vsyncpa [#allocation3], 1 }
 0xb5a   :  { %2515 = vsyncpa [#allocation3 + $0x1], 1 }
 0xb5b   :  { %2516 = vsyncpa [#allocation5], 1 }
 0xb5c   :  { %2517 = vsyncpa [#allocation8], 1 }
 0xb5d   :  { %2518 = vsyncpa [#allocation11], 1 }
 0xb5e   :  { %2519 = vsyncpa [#allocation14], 1 }
 0xb5f   :  { %2520 = vsyncpa [#allocation17], 1 }

</bundles_post_ra>
